<compile_context>
chip_gen: v7x
topology: tpu7x:2x2x1
jax: 0.10.0
libtpu: 0.0.40
codegen_flags: <defaults>
</compile_context>

<pallas_src>
import functools

import jax
import jax.numpy as jnp
from jax import lax
from jax.experimental import pallas as pl
from jax.experimental.pallas import tpu as pltpu


def cbam_kernel(x_ref, w1_ref, b1_ref, w2a_ref, b2a_ref, w2b_ref, b2b_ref,
                w3a_ref, b3a_ref, w3b_ref, b3b_ref, o_ref, *, H, W):
    HW = H * W
    x = x_ref[...]                                       # (C, H*W) f32

    # Lane masks that zero the width wrap-around of flat-index shifts by +-1.
    wcol = lax.broadcasted_iota(jnp.int32, (1, HW), 1) % W
    keep_dw_pos = (wcol != W - 1).astype(jnp.float32)    # reading (h, w+1) is valid
    keep_dw_neg = (wcol != 0).astype(jnp.float32)        # reading (h, w-1) is valid

    def conv3x3(inp, wm_ref, b_ref):
        """SAME 3x3 conv as one im2col matmul.
        inp: (Cin, H*W) f32, wm_ref: (Cout, 9*Cin) bf16, b_ref: (Cout, 1) f32
        -> (Cout, H*W) f32."""
        cin = inp.shape[0]
        pad = W + 1
        zeros = jnp.zeros((cin, pad), jnp.float32)
        xpad = jnp.concatenate([zeros, inp, zeros], axis=1)      # pad once
        parts = []
        for dh in (-1, 0, 1):                                    # static 9 taps
            for dw in (-1, 0, 1):
                start = pad + dh * W + dw
                xs = xpad[:, start:start + HW]                   # static lane slice
                if dw == 1:
                    xs = xs * keep_dw_pos
                elif dw == -1:
                    xs = xs * keep_dw_neg
                parts.append(xs)
        patches = jnp.concatenate(parts, axis=0).astype(jnp.bfloat16)   # (9*Cin, H*W)
        y = jnp.dot(wm_ref[...], patches, preferred_element_type=jnp.float32)
        return y + b_ref[...]

    # ---- conv1: 3x3, C -> C, pad=1 ----
    h = conv3x3(x, w1_ref, b1_ref)                       # (C, H*W)

    # ---- channel attention: shared MLP on [avg-pool | max-pool], fused in one pass ----
    avg = jnp.mean(h, axis=1, keepdims=True)             # (C, 1)
    mx = jnp.max(h, axis=1, keepdims=True)               # (C, 1)
    pooled = jnp.concatenate([avg, mx], axis=1).astype(jnp.bfloat16)    # (C, 2)
    hid = jnp.maximum(
        jnp.dot(w2a_ref[...], pooled, preferred_element_type=jnp.float32)
        + b2a_ref[...], 0.0)                             # (C, 2)
    out2 = (jnp.dot(w2b_ref[...], hid.astype(jnp.bfloat16),
                    preferred_element_type=jnp.float32) + b2b_ref[...])  # (C, 2)
    ca = jax.nn.sigmoid(out2[:, 0:1] + out2[:, 1:2])     # (C, 1)
    h = h * ca                                           # broadcast over lanes

    # ---- spatial attention: [mean_c, max_c] -> conv(2->16) -> relu -> conv(16->1) ----
    sm = jnp.concatenate([jnp.mean(h, axis=0, keepdims=True),
                          jnp.max(h, axis=0, keepdims=True)], axis=0)    # (2, H*W)
    s = jnp.maximum(conv3x3(sm, w3a_ref, b3a_ref), 0.0)  # (16, H*W)
    s = jax.nn.sigmoid(conv3x3(s, w3b_ref, b3b_ref))     # (1, H*W)

    o_ref[...] = (h * s).astype(o_ref.dtype)             # broadcast over sublanes


def cbam_forward(x_nchw, params):
    B, C, H, W = x_nchw.shape
    HW = H * W
    w1, b1, w2a, b2a, w2b, b2b, w3a, b3a, w3b, b3b = params

    # Repack weights for the (C, H*W) kernel layout / im2col matmuls (bf16 MXU operands,
    # f32 biases / accumulation).
    def conv_w(w):                                        # (3,3,Cin,Cout) -> (Cout, 9*Cin)
        cout = w.shape[-1]
        return jnp.transpose(w, (3, 0, 1, 2)).reshape(cout, -1).astype(jnp.bfloat16)

    col = lambda b: b.reshape(-1, 1).astype(jnp.float32)
    kparams = (conv_w(w1), col(b1),
               w2a.T.astype(jnp.bfloat16), col(b2a),
               w2b.T.astype(jnp.bfloat16), col(b2b),
               conv_w(w3a), col(b3a), conv_w(w3b), col(b3b))

    x_flat = x_nchw.reshape(B, C, HW)                     # NCHW is already (B, C, H*W) flat

    kernel = functools.partial(cbam_kernel, H=H, W=W)
    # Grid over batch, marked "parallel": per-step overhead is negligible on single-TC
    # v5e/v6e and it lets v7x's two TensorCores split the batch.
    # TODO(synk): for production-size images, tile H with a 1-row halo to stay inside
    # v7x's 64 MiB VMEM and restore double-buffered HBM overlap.
    out = pl.pallas_call(
        kernel,
        out_shape=jax.ShapeDtypeStruct((B, C, HW), x_nchw.dtype),
        grid_spec=pltpu.PrefetchScalarGridSpec(
            num_scalar_prefetch=0,
            grid=(B,),
            in_specs=[pl.BlockSpec((None, C, HW), lambda b: (b, 0, 0))]
                     + [pl.BlockSpec(p.shape, lambda b: (0, 0)) for p in kparams],
            out_specs=pl.BlockSpec((None, C, HW), lambda b: (b, 0, 0)),
        ),
        compiler_params=pltpu.CompilerParams(dimension_semantics=("parallel",)),
    )(x_flat, *kparams)
    return out.reshape(B, C, H, W)


def cbam_ref(x, params):
    """Pure-JAX f32 reference (NCHW) mirroring the PyTorch forward."""
    w1, b1, w2a, b2a, w2b, b2b, w3a, b3a, w3b, b3b = params
    dn = ('NCHW', 'HWIO', 'NCHW')
    conv = lambda a, w: lax.conv_general_dilated(a, w, (1, 1), 'SAME',
                                                 dimension_numbers=dn)
    h = conv(x, w1) + b1.reshape(1, -1, 1, 1)
    avg = jnp.mean(h, axis=(2, 3))
    mx = jnp.max(h, axis=(2, 3))
    mlp = lambda v: jnp.maximum(v @ w2a + b2a, 0.0) @ w2b + b2b
    ca = jax.nn.sigmoid(mlp(avg) + mlp(mx))
    h = h * ca[:, :, None, None]
    sm = jnp.concatenate([jnp.mean(h, 1, keepdims=True),
                          jnp.max(h, 1, keepdims=True)], axis=1)
    s = jnp.maximum(conv(sm, w3a) + b3a.reshape(1, -1, 1, 1), 0.0)
    s = conv(s, w3b) + b3b.reshape(1, -1, 1, 1)
    return h * jax.nn.sigmoid(s)


if __name__ == "__main__":
    B, C, H, W = 2, 4, 16, 16
    key = jax.random.PRNGKey(0)
    keys = jax.random.split(key, 6)

    def kaiming_uniform(k, shape, fan_in):
        bound = (6.0 / fan_in) ** 0.5          # nn.init.kaiming_uniform_ default
        return jax.random.uniform(k, shape, jnp.float32, -bound, bound)

    # conv1: Conv2d(C, C, 3, 1, 1)
    w1 = kaiming_uniform(keys[0], (3, 3, C, C), 3 * 3 * C)
    b1 = jnp.zeros((1, C), jnp.float32)
    # conv2: [Conv2d(C, C, 1) + ReLU, Conv2d(C, C, 1)] -> stored as (Cin, Cout) matrices
    w2a = kaiming_uniform(keys[1], (C, C), C)
    b2a = jnp.zeros((1, C), jnp.float32)
    w2b = kaiming_uniform(keys[2], (C, C), C)
    b2b = jnp.zeros((1, C), jnp.float32)
    # conv3: [Conv2d(2, 16, 3, 1, 1) + ReLU, Conv2d(16, 1, 3, 1, 1)]
    w3a = kaiming_uniform(keys[3], (3, 3, 2, 16), 3 * 3 * 2)
    b3a = jnp.zeros((1, 16), jnp.float32)
    w3b = kaiming_uniform(keys[4], (3, 3, 16, 1), 3 * 3 * 16)
    b3b = jnp.zeros((1, 1), jnp.float32)
    params = (w1, b1, w2a, b2a, w2b, b2b, w3a, b3a, w3b, b3b)

    # NCHW input, exactly as the PyTorch module would receive it.
    x = jax.random.normal(keys[5], (B, C, H, W), jnp.float32)

    out = jax.block_until_ready(cbam_forward(x, params))
    ref = cbam_ref(x, params)
    err = float(jnp.max(jnp.abs(out - ref)))
    # bf16 MXU operands with f32 accumulation -> looser tolerance vs. the pure-f32 reference.
    assert jnp.allclose(out, ref, rtol=5e-2, atol=5e-2), f"max abs err {err}"
    print("KERNEL_OK")
</pallas_src>

<mosaic_0001>
module attributes {stable_mosaic.version = 11 : i64} {
  func.func @cbam_kernel(%arg0: i32, %arg1: memref<1x4x256xf32, #tpu.memory_space<vmem>>, %arg2: memref<4x36xbf16, #tpu.memory_space<vmem>>, %arg3: memref<4x1xf32, #tpu.memory_space<vmem>>, %arg4: memref<4x4xbf16, #tpu.memory_space<vmem>>, %arg5: memref<4x1xf32, #tpu.memory_space<vmem>>, %arg6: memref<4x4xbf16, #tpu.memory_space<vmem>>, %arg7: memref<4x1xf32, #tpu.memory_space<vmem>>, %arg8: memref<16x18xbf16, #tpu.memory_space<vmem>>, %arg9: memref<16x1xf32, #tpu.memory_space<vmem>>, %arg10: memref<1x144xbf16, #tpu.memory_space<vmem>>, %arg11: memref<1x1xf32, #tpu.memory_space<vmem>>, %arg12: memref<1x4x256xf32, #tpu.memory_space<vmem>>) attributes {dimension_semantics = [#tpu.dimension_semantics<parallel>], iteration_bounds = array<i64: 2>, scalar_prefetch = 0 : i64, scratch_operands = 0 : i64, tpu.core_type = #tpu.core_type<tc>, window_params = [{transform_indices = @transform_0, window_bounds = array<i64: 1, 4, 256>}, {pipeline_mode = #tpu.pipeline_mode<synchronous>, transform_indices = @transform_1, window_bounds = array<i64: 4, 36>}, {pipeline_mode = #tpu.pipeline_mode<synchronous>, transform_indices = @transform_2, window_bounds = array<i64: 4, 1>}, {pipeline_mode = #tpu.pipeline_mode<synchronous>, transform_indices = @transform_3, window_bounds = array<i64: 4, 4>}, {pipeline_mode = #tpu.pipeline_mode<synchronous>, transform_indices = @transform_4, window_bounds = array<i64: 4, 1>}, {pipeline_mode = #tpu.pipeline_mode<synchronous>, transform_indices = @transform_5, window_bounds = array<i64: 4, 4>}, {pipeline_mode = #tpu.pipeline_mode<synchronous>, transform_indices = @transform_6, window_bounds = array<i64: 4, 1>}, {pipeline_mode = #tpu.pipeline_mode<synchronous>, transform_indices = @transform_7, window_bounds = array<i64: 16, 18>}, {pipeline_mode = #tpu.pipeline_mode<synchronous>, transform_indices = @transform_8, window_bounds = array<i64: 16, 1>}, {pipeline_mode = #tpu.pipeline_mode<synchronous>, transform_indices = @transform_9, window_bounds = array<i64: 1, 144>}, {pipeline_mode = #tpu.pipeline_mode<synchronous>, transform_indices = @transform_10, window_bounds = array<i64: 1, 1>}, {transform_indices = @transform_11, window_bounds = array<i64: 1, 4, 256>}]} {
    %c0 = arith.constant 0 : index
    %c0_0 = arith.constant 0 : index
    %c0_1 = arith.constant 0 : index
    %0 = vector.load %arg1[%c0, %c0_0, %c0_1] : memref<1x4x256xf32, #tpu.memory_space<vmem>>, vector<1x4x256xf32>
    %1 = vector.shape_cast %0 : vector<1x4x256xf32> to vector<4x256xf32>
    %2 = tpu.iota {dimensions = array<i32: 1>} : vector<1x256xi32>
    %c16_i32 = arith.constant 16 : i32
    %c0_i32 = arith.constant 0 : i32
    %3 = arith.cmpi eq, %c16_i32, %c0_i32 : i32
    %c1_i32 = arith.constant 1 : i32
    %4 = arith.select %3, %c1_i32, %c16_i32 : i32
    %5 = vector.broadcast %4 : i32 to vector<1x256xi32>
    %6 = arith.remsi %2, %5 : vector<1x256xi32>
    %c0_i32_2 = arith.constant 0 : i32
    %7 = vector.broadcast %c0_i32_2 : i32 to vector<1x256xi32>
    %8 = arith.cmpi ne, %6, %7 : vector<1x256xi32>
    %c0_i32_3 = arith.constant 0 : i32
    %9 = vector.broadcast %c0_i32_3 : i32 to vector<1x256xi32>
    %10 = arith.cmpi slt, %6, %9 : vector<1x256xi32>
    %c0_i32_4 = arith.constant 0 : i32
    %11 = arith.cmpi slt, %4, %c0_i32_4 : i32
    %12 = vector.broadcast %11 : i1 to vector<1x256xi1>
    %13 = vector.broadcast %12 : vector<1x256xi1> to vector<1x256xi1>
    %14 = arith.xori %10, %13 : vector<1x256xi1>
    %15 = arith.andi %14, %8 : vector<1x256xi1>
    %16 = vector.broadcast %4 : i32 to vector<1x256xi32>
    %17 = arith.addi %6, %16 : vector<1x256xi32>
    %18 = arith.select %15, %17, %6 : vector<1x256xi1>, vector<1x256xi32>
    %c15_i32 = arith.constant 15 : i32
    %19 = vector.broadcast %c15_i32 : i32 to vector<1x256xi32>
    %20 = arith.cmpi ne, %18, %19 : vector<1x256xi32>
    %21 = arith.extui %20 : vector<1x256xi1> to vector<1x256xi32>
    %22 = arith.sitofp %21 : vector<1x256xi32> to vector<1x256xf32>
    %c0_i32_5 = arith.constant 0 : i32
    %23 = vector.broadcast %c0_i32_5 : i32 to vector<1x256xi32>
    %24 = arith.cmpi ne, %18, %23 : vector<1x256xi32>
    %25 = arith.extui %24 : vector<1x256xi1> to vector<1x256xi32>
    %26 = arith.sitofp %25 : vector<1x256xi32> to vector<1x256xf32>
    %cst = arith.constant 0.000000e+00 : f32
    %27 = vector.broadcast %cst : f32 to vector<4x17xf32>
    %28 = tpu.concatenate %27, %1, %27 in 1 : vector<4x17xf32>, vector<4x256xf32>, vector<4x17xf32> -> vector<4x290xf32>
    %29 = vector.extract_strided_slice %28 {offsets = [0, 0], sizes = [4, 256], strides = [1, 1]} : vector<4x290xf32> to vector<4x256xf32>
    %30 = vector.broadcast %26 : vector<1x256xf32> to vector<4x256xf32>
    %31 = arith.mulf %29, %30 : vector<4x256xf32>
    %32 = vector.extract_strided_slice %28 {offsets = [0, 1], sizes = [4, 256], strides = [1, 1]} : vector<4x290xf32> to vector<4x256xf32>
    %33 = vector.extract_strided_slice %28 {offsets = [0, 2], sizes = [4, 256], strides = [1, 1]} : vector<4x290xf32> to vector<4x256xf32>
    %34 = vector.broadcast %22 : vector<1x256xf32> to vector<4x256xf32>
    %35 = arith.mulf %33, %34 : vector<4x256xf32>
    %36 = vector.extract_strided_slice %28 {offsets = [0, 16], sizes = [4, 256], strides = [1, 1]} : vector<4x290xf32> to vector<4x256xf32>
    %37 = vector.broadcast %26 : vector<1x256xf32> to vector<4x256xf32>
    %38 = arith.mulf %36, %37 : vector<4x256xf32>
    %39 = vector.extract_strided_slice %28 {offsets = [0, 17], sizes = [4, 256], strides = [1, 1]} : vector<4x290xf32> to vector<4x256xf32>
    %40 = vector.extract_strided_slice %28 {offsets = [0, 18], sizes = [4, 256], strides = [1, 1]} : vector<4x290xf32> to vector<4x256xf32>
    %41 = vector.broadcast %22 : vector<1x256xf32> to vector<4x256xf32>
    %42 = arith.mulf %40, %41 : vector<4x256xf32>
    %43 = vector.extract_strided_slice %28 {offsets = [0, 32], sizes = [4, 256], strides = [1, 1]} : vector<4x290xf32> to vector<4x256xf32>
    %44 = vector.broadcast %26 : vector<1x256xf32> to vector<4x256xf32>
    %45 = arith.mulf %43, %44 : vector<4x256xf32>
    %46 = vector.extract_strided_slice %28 {offsets = [0, 33], sizes = [4, 256], strides = [1, 1]} : vector<4x290xf32> to vector<4x256xf32>
    %47 = vector.extract_strided_slice %28 {offsets = [0, 34], sizes = [4, 256], strides = [1, 1]} : vector<4x290xf32> to vector<4x256xf32>
    %48 = vector.broadcast %22 : vector<1x256xf32> to vector<4x256xf32>
    %49 = arith.mulf %47, %48 : vector<4x256xf32>
    %50 = tpu.concatenate %31, %32, %35, %38, %39, %42, %45, %46, %49 in 0 : vector<4x256xf32>, vector<4x256xf32>, vector<4x256xf32>, vector<4x256xf32>, vector<4x256xf32>, vector<4x256xf32>, vector<4x256xf32>, vector<4x256xf32>, vector<4x256xf32> -> vector<36x256xf32>
    %51 = arith.truncf %50 : vector<36x256xf32> to vector<36x256xbf16>
    %c0_6 = arith.constant 0 : index
    %c0_7 = arith.constant 0 : index
    %52 = vector.load %arg2[%c0_6, %c0_7] : memref<4x36xbf16, #tpu.memory_space<vmem>>, vector<4x36xbf16>
    %cst_8 = arith.constant dense<0.000000e+00> : vector<4x256xf32>
    %53 = tpu.matmul %52, %51, %cst_8 {dimension_numbers = #tpu.dot_dimension_numbers<[1], [0], [0], [1], [0, 0, 1, 1], [], []>} : vector<4x36xbf16>, vector<36x256xbf16>, vector<4x256xf32> -> vector<4x256xf32>
    %c0_9 = arith.constant 0 : index
    %c0_10 = arith.constant 0 : index
    %54 = vector.load %arg3[%c0_9, %c0_10] : memref<4x1xf32, #tpu.memory_space<vmem>>, vector<4x1xf32>
    %55 = vector.broadcast %54 : vector<4x1xf32> to vector<4x256xf32>
    %56 = arith.addf %53, %55 : vector<4x256xf32>
    %cst_11 = arith.constant dense<0.000000e+00> : vector<4xf32>
    %57 = vector.multi_reduction <add>, %56, %cst_11 [1] : vector<4x256xf32> to vector<4xf32>
    %58 = vector.shape_cast %57 : vector<4xf32> to vector<4x1xf32>
    %cst_12 = arith.constant 2.560000e+02 : f32
    %59 = vector.broadcast %cst_12 : f32 to vector<4x1xf32>
    %60 = arith.divf %58, %59 : vector<4x1xf32>
    %cst_13 = arith.constant dense<0xFF800000> : vector<4xf32>
    %61 = vector.multi_reduction <maximumf>, %56, %cst_13 [1] : vector<4x256xf32> to vector<4xf32>
    %62 = vector.shape_cast %61 : vector<4xf32> to vector<4x1xf32>
    %63 = tpu.concatenate %60, %62 in 1 : vector<4x1xf32>, vector<4x1xf32> -> vector<4x2xf32>
    %64 = arith.truncf %63 : vector<4x2xf32> to vector<4x2xbf16>
    %c0_14 = arith.constant 0 : index
    %c0_15 = arith.constant 0 : index
    %65 = vector.load %arg4[%c0_14, %c0_15] : memref<4x4xbf16, #tpu.memory_space<vmem>>, vector<4x4xbf16>
    %cst_16 = arith.constant dense<0.000000e+00> : vector<4x2xf32>
    %66 = tpu.matmul %65, %64, %cst_16 {dimension_numbers = #tpu.dot_dimension_numbers<[1], [0], [0], [1], [0, 0, 1, 1], [], []>} : vector<4x4xbf16>, vector<4x2xbf16>, vector<4x2xf32> -> vector<4x2xf32>
    %c0_17 = arith.constant 0 : index
    %c0_18 = arith.constant 0 : index
    %67 = vector.load %arg5[%c0_17, %c0_18] : memref<4x1xf32, #tpu.memory_space<vmem>>, vector<4x1xf32>
    %68 = vector.broadcast %67 : vector<4x1xf32> to vector<4x2xf32>
    %69 = arith.addf %66, %68 : vector<4x2xf32>
    %cst_19 = arith.constant 0.000000e+00 : f32
    %70 = vector.broadcast %cst_19 : f32 to vector<4x2xf32>
    %71 = arith.maximumf %69, %70 : vector<4x2xf32>
    %c0_20 = arith.constant 0 : index
    %c0_21 = arith.constant 0 : index
    %72 = vector.load %arg6[%c0_20, %c0_21] : memref<4x4xbf16, #tpu.memory_space<vmem>>, vector<4x4xbf16>
    %73 = arith.truncf %71 : vector<4x2xf32> to vector<4x2xbf16>
    %cst_22 = arith.constant dense<0.000000e+00> : vector<4x2xf32>
    %74 = tpu.matmul %72, %73, %cst_22 {dimension_numbers = #tpu.dot_dimension_numbers<[1], [0], [0], [1], [0, 0, 1, 1], [], []>} : vector<4x4xbf16>, vector<4x2xbf16>, vector<4x2xf32> -> vector<4x2xf32>
    %c0_23 = arith.constant 0 : index
    %c0_24 = arith.constant 0 : index
    %75 = vector.load %arg7[%c0_23, %c0_24] : memref<4x1xf32, #tpu.memory_space<vmem>>, vector<4x1xf32>
    %76 = vector.broadcast %75 : vector<4x1xf32> to vector<4x2xf32>
    %77 = arith.addf %74, %76 : vector<4x2xf32>
    %78 = vector.extract_strided_slice %77 {offsets = [0, 0], sizes = [4, 1], strides = [1, 1]} : vector<4x2xf32> to vector<4x1xf32>
    %79 = vector.extract_strided_slice %77 {offsets = [0, 1], sizes = [4, 1], strides = [1, 1]} : vector<4x2xf32> to vector<4x1xf32>
    %80 = arith.addf %78, %79 : vector<4x1xf32>
    %81 = arith.negf %80 : vector<4x1xf32>
    %82 = math.exp %81 : vector<4x1xf32>
    %cst_25 = arith.constant 1.000000e+00 : f32
    %83 = vector.broadcast %cst_25 : f32 to vector<4x1xf32>
    %84 = arith.addf %83, %82 : vector<4x1xf32>
    %85 = arith.divf %83, %84 : vector<4x1xf32>
    %86 = vector.broadcast %85 : vector<4x1xf32> to vector<4x256xf32>
    %87 = arith.mulf %56, %86 : vector<4x256xf32>
    %cst_26 = arith.constant dense<0.000000e+00> : vector<256xf32>
    %88 = vector.multi_reduction <add>, %87, %cst_26 [0] : vector<4x256xf32> to vector<256xf32>
    %89 = vector.shape_cast %88 : vector<256xf32> to vector<1x256xf32>
    %cst_27 = arith.constant 4.000000e+00 : f32
    %90 = vector.broadcast %cst_27 : f32 to vector<1x256xf32>
    %91 = arith.divf %89, %90 : vector<1x256xf32>
    %cst_28 = arith.constant dense<0xFF800000> : vector<256xf32>
    %92 = vector.multi_reduction <maximumf>, %87, %cst_28 [0] : vector<4x256xf32> to vector<256xf32>
    %93 = vector.shape_cast %92 : vector<256xf32> to vector<1x256xf32>
    %94 = tpu.concatenate %91, %93 in 0 : vector<1x256xf32>, vector<1x256xf32> -> vector<2x256xf32>
    %cst_29 = arith.constant 0.000000e+00 : f32
    %95 = vector.broadcast %cst_29 : f32 to vector<2x17xf32>
    %96 = tpu.concatenate %95, %94, %95 in 1 : vector<2x17xf32>, vector<2x256xf32>, vector<2x17xf32> -> vector<2x290xf32>
    %97 = vector.extract_strided_slice %96 {offsets = [0, 0], sizes = [2, 256], strides = [1, 1]} : vector<2x290xf32> to vector<2x256xf32>
    %98 = vector.broadcast %26 : vector<1x256xf32> to vector<2x256xf32>
    %99 = arith.mulf %97, %98 : vector<2x256xf32>
    %100 = vector.extract_strided_slice %96 {offsets = [0, 1], sizes = [2, 256], strides = [1, 1]} : vector<2x290xf32> to vector<2x256xf32>
    %101 = vector.extract_strided_slice %96 {offsets = [0, 2], sizes = [2, 256], strides = [1, 1]} : vector<2x290xf32> to vector<2x256xf32>
    %102 = vector.broadcast %22 : vector<1x256xf32> to vector<2x256xf32>
    %103 = arith.mulf %101, %102 : vector<2x256xf32>
    %104 = vector.extract_strided_slice %96 {offsets = [0, 16], sizes = [2, 256], strides = [1, 1]} : vector<2x290xf32> to vector<2x256xf32>
    %105 = vector.broadcast %26 : vector<1x256xf32> to vector<2x256xf32>
    %106 = arith.mulf %104, %105 : vector<2x256xf32>
    %107 = vector.extract_strided_slice %96 {offsets = [0, 17], sizes = [2, 256], strides = [1, 1]} : vector<2x290xf32> to vector<2x256xf32>
    %108 = vector.extract_strided_slice %96 {offsets = [0, 18], sizes = [2, 256], strides = [1, 1]} : vector<2x290xf32> to vector<2x256xf32>
    %109 = vector.broadcast %22 : vector<1x256xf32> to vector<2x256xf32>
    %110 = arith.mulf %108, %109 : vector<2x256xf32>
    %111 = vector.extract_strided_slice %96 {offsets = [0, 32], sizes = [2, 256], strides = [1, 1]} : vector<2x290xf32> to vector<2x256xf32>
    %112 = vector.broadcast %26 : vector<1x256xf32> to vector<2x256xf32>
    %113 = arith.mulf %111, %112 : vector<2x256xf32>
    %114 = vector.extract_strided_slice %96 {offsets = [0, 33], sizes = [2, 256], strides = [1, 1]} : vector<2x290xf32> to vector<2x256xf32>
    %115 = vector.extract_strided_slice %96 {offsets = [0, 34], sizes = [2, 256], strides = [1, 1]} : vector<2x290xf32> to vector<2x256xf32>
    %116 = vector.broadcast %22 : vector<1x256xf32> to vector<2x256xf32>
    %117 = arith.mulf %115, %116 : vector<2x256xf32>
    %118 = tpu.concatenate %99, %100, %103, %106, %107, %110, %113, %114, %117 in 0 : vector<2x256xf32>, vector<2x256xf32>, vector<2x256xf32>, vector<2x256xf32>, vector<2x256xf32>, vector<2x256xf32>, vector<2x256xf32>, vector<2x256xf32>, vector<2x256xf32> -> vector<18x256xf32>
    %119 = arith.truncf %118 : vector<18x256xf32> to vector<18x256xbf16>
    %c0_30 = arith.constant 0 : index
    %c0_31 = arith.constant 0 : index
    %120 = vector.load %arg8[%c0_30, %c0_31] : memref<16x18xbf16, #tpu.memory_space<vmem>>, vector<16x18xbf16>
    %cst_32 = arith.constant dense<0.000000e+00> : vector<16x256xf32>
    %121 = tpu.matmul %120, %119, %cst_32 {dimension_numbers = #tpu.dot_dimension_numbers<[1], [0], [0], [1], [0, 0, 1, 1], [], []>} : vector<16x18xbf16>, vector<18x256xbf16>, vector<16x256xf32> -> vector<16x256xf32>
    %c0_33 = arith.constant 0 : index
    %c0_34 = arith.constant 0 : index
    %122 = vector.load %arg9[%c0_33, %c0_34] : memref<16x1xf32, #tpu.memory_space<vmem>>, vector<16x1xf32>
    %123 = vector.broadcast %122 : vector<16x1xf32> to vector<16x256xf32>
    %124 = arith.addf %121, %123 : vector<16x256xf32>
    %cst_35 = arith.constant 0.000000e+00 : f32
    %125 = vector.broadcast %cst_35 : f32 to vector<16x256xf32>
    %126 = arith.maximumf %124, %125 : vector<16x256xf32>
    %cst_36 = arith.constant 0.000000e+00 : f32
    %127 = vector.broadcast %cst_36 : f32 to vector<16x17xf32>
    %128 = tpu.concatenate %127, %126, %127 in 1 : vector<16x17xf32>, vector<16x256xf32>, vector<16x17xf32> -> vector<16x290xf32>
    %129 = vector.extract_strided_slice %128 {offsets = [0, 0], sizes = [16, 256], strides = [1, 1]} : vector<16x290xf32> to vector<16x256xf32>
    %130 = vector.broadcast %26 : vector<1x256xf32> to vector<16x256xf32>
    %131 = arith.mulf %129, %130 : vector<16x256xf32>
    %132 = vector.extract_strided_slice %128 {offsets = [0, 1], sizes = [16, 256], strides = [1, 1]} : vector<16x290xf32> to vector<16x256xf32>
    %133 = vector.extract_strided_slice %128 {offsets = [0, 2], sizes = [16, 256], strides = [1, 1]} : vector<16x290xf32> to vector<16x256xf32>
    %134 = vector.broadcast %22 : vector<1x256xf32> to vector<16x256xf32>
    %135 = arith.mulf %133, %134 : vector<16x256xf32>
    %136 = vector.extract_strided_slice %128 {offsets = [0, 16], sizes = [16, 256], strides = [1, 1]} : vector<16x290xf32> to vector<16x256xf32>
    %137 = vector.broadcast %26 : vector<1x256xf32> to vector<16x256xf32>
    %138 = arith.mulf %136, %137 : vector<16x256xf32>
    %139 = vector.extract_strided_slice %128 {offsets = [0, 17], sizes = [16, 256], strides = [1, 1]} : vector<16x290xf32> to vector<16x256xf32>
    %140 = vector.extract_strided_slice %128 {offsets = [0, 18], sizes = [16, 256], strides = [1, 1]} : vector<16x290xf32> to vector<16x256xf32>
    %141 = vector.broadcast %22 : vector<1x256xf32> to vector<16x256xf32>
    %142 = arith.mulf %140, %141 : vector<16x256xf32>
    %143 = vector.extract_strided_slice %128 {offsets = [0, 32], sizes = [16, 256], strides = [1, 1]} : vector<16x290xf32> to vector<16x256xf32>
    %144 = vector.broadcast %26 : vector<1x256xf32> to vector<16x256xf32>
    %145 = arith.mulf %143, %144 : vector<16x256xf32>
    %146 = vector.extract_strided_slice %128 {offsets = [0, 33], sizes = [16, 256], strides = [1, 1]} : vector<16x290xf32> to vector<16x256xf32>
    %147 = vector.extract_strided_slice %128 {offsets = [0, 34], sizes = [16, 256], strides = [1, 1]} : vector<16x290xf32> to vector<16x256xf32>
    %148 = vector.broadcast %22 : vector<1x256xf32> to vector<16x256xf32>
    %149 = arith.mulf %147, %148 : vector<16x256xf32>
    %150 = tpu.concatenate %131, %132, %135, %138, %139, %142, %145, %146, %149 in 0 : vector<16x256xf32>, vector<16x256xf32>, vector<16x256xf32>, vector<16x256xf32>, vector<16x256xf32>, vector<16x256xf32>, vector<16x256xf32>, vector<16x256xf32>, vector<16x256xf32> -> vector<144x256xf32>
    %151 = arith.truncf %150 : vector<144x256xf32> to vector<144x256xbf16>
    %c0_37 = arith.constant 0 : index
    %c0_38 = arith.constant 0 : index
    %152 = vector.load %arg10[%c0_37, %c0_38] : memref<1x144xbf16, #tpu.memory_space<vmem>>, vector<1x144xbf16>
    %cst_39 = arith.constant dense<0.000000e+00> : vector<1x256xf32>
    %153 = tpu.matmul %152, %151, %cst_39 {dimension_numbers = #tpu.dot_dimension_numbers<[1], [0], [0], [1], [0, 0, 1, 1], [], []>} : vector<1x144xbf16>, vector<144x256xbf16>, vector<1x256xf32> -> vector<1x256xf32>
    %c0_40 = arith.constant 0 : index
    %c0_41 = arith.constant 0 : index
    %154 = vector.load %arg11[%c0_40, %c0_41] : memref<1x1xf32, #tpu.memory_space<vmem>>, vector<1x1xf32>
    %155 = vector.broadcast %154 : vector<1x1xf32> to vector<1x256xf32>
    %156 = arith.addf %153, %155 : vector<1x256xf32>
    %157 = arith.negf %156 : vector<1x256xf32>
    %158 = math.exp %157 : vector<1x256xf32>
    %cst_42 = arith.constant 1.000000e+00 : f32
    %159 = vector.broadcast %cst_42 : f32 to vector<1x256xf32>
    %160 = arith.addf %159, %158 : vector<1x256xf32>
    %161 = arith.divf %159, %160 : vector<1x256xf32>
    %162 = vector.broadcast %161 : vector<1x256xf32> to vector<4x256xf32>
    %163 = arith.mulf %87, %162 : vector<4x256xf32>
    %c0_43 = arith.constant 0 : index
    %c0_44 = arith.constant 0 : index
    %c0_45 = arith.constant 0 : index
    %164 = vector.load %arg12[%c0_43, %c0_44, %c0_45] : memref<1x4x256xf32, #tpu.memory_space<vmem>>, vector<1x4x256xf32>
    %165 = vector.shape_cast %164 : vector<1x4x256xf32> to vector<4x256xf32>
    %166 = vector.shape_cast %163 : vector<4x256xf32> to vector<1x4x256xf32>
    tpu.vector_store %arg12[%c0_43, %c0_44, %c0_45], %166 {strides = array<i32>} : memref<1x4x256xf32, #tpu.memory_space<vmem>>, vector<1x4x256xf32>,
    return
  }
  func.func @transform_0(%arg0: i32) -> (i32, i32, i32) {
    %c0_i32 = arith.constant 0 : i32
    %c0_i32_0 = arith.constant 0 : i32
    %c0_i32_1 = arith.constant 0 : i32
    return %arg0, %c0_i32, %c0_i32_0 : i32, i32, i32
  }
  func.func @transform_1(%arg0: i32) -> (i32, i32) {
    %c0_i32 = arith.constant 0 : i32
    %c0_i32_0 = arith.constant 0 : i32
    %c0_i32_1 = arith.constant 0 : i32
    return %c0_i32, %c0_i32_0 : i32, i32
  }
  func.func @transform_2(%arg0: i32) -> (i32, i32) {
    %c0_i32 = arith.constant 0 : i32
    %c0_i32_0 = arith.constant 0 : i32
    %c0_i32_1 = arith.constant 0 : i32
    return %c0_i32, %c0_i32_0 : i32, i32
  }
  func.func @transform_3(%arg0: i32) -> (i32, i32) {
    %c0_i32 = arith.constant 0 : i32
    %c0_i32_0 = arith.constant 0 : i32
    %c0_i32_1 = arith.constant 0 : i32
    return %c0_i32, %c0_i32_0 : i32, i32
  }
  func.func @transform_4(%arg0: i32) -> (i32, i32) {
    %c0_i32 = arith.constant 0 : i32
    %c0_i32_0 = arith.constant 0 : i32
    %c0_i32_1 = arith.constant 0 : i32
    return %c0_i32, %c0_i32_0 : i32, i32
  }
  func.func @transform_5(%arg0: i32) -> (i32, i32) {
    %c0_i32 = arith.constant 0 : i32
    %c0_i32_0 = arith.constant 0 : i32
    %c0_i32_1 = arith.constant 0 : i32
    return %c0_i32, %c0_i32_0 : i32, i32
  }
  func.func @transform_6(%arg0: i32) -> (i32, i32) {
    %c0_i32 = arith.constant 0 : i32
    %c0_i32_0 = arith.constant 0 : i32
    %c0_i32_1 = arith.constant 0 : i32
    return %c0_i32, %c0_i32_0 : i32, i32
  }
  func.func @transform_7(%arg0: i32) -> (i32, i32) {
    %c0_i32 = arith.constant 0 : i32
    %c0_i32_0 = arith.constant 0 : i32
    %c0_i32_1 = arith.constant 0 : i32
    return %c0_i32, %c0_i32_0 : i32, i32
  }
  func.func @transform_8(%arg0: i32) -> (i32, i32) {
    %c0_i32 = arith.constant 0 : i32
    %c0_i32_0 = arith.constant 0 : i32
    %c0_i32_1 = arith.constant 0 : i32
    return %c0_i32, %c0_i32_0 : i32, i32
  }
  func.func @transform_9(%arg0: i32) -> (i32, i32) {
    %c0_i32 = arith.constant 0 : i32
    %c0_i32_0 = arith.constant 0 : i32
    %c0_i32_1 = arith.constant 0 : i32
    return %c0_i32, %c0_i32_0 : i32, i32
  }
  func.func @transform_10(%arg0: i32) -> (i32, i32) {
    %c0_i32 = arith.constant 0 : i32
    %c0_i32_0 = arith.constant 0 : i32
    %c0_i32_1 = arith.constant 0 : i32
    return %c0_i32, %c0_i32_0 : i32, i32
  }
  func.func @transform_11(%arg0: i32) -> (i32, i32, i32) {
    %c0_i32 = arith.constant 0 : i32
    %c0_i32_0 = arith.constant 0 : i32
    %c0_i32_1 = arith.constant 0 : i32
    return %arg0, %c0_i32, %c0_i32_0 : i32, i32, i32
  }
}

</mosaic_0001>

<bundles_post_ra>
// kernel: tpu_custom_call.1
= control target key start
LH: loop header
LB: loop body
LE: loop exit
PB: predicated region body
PF: predicated region fallthrough
CT: control target
= control target key end

     0   :  { %s2639_s0 = inlined_call_operand.vmem [shape: f32[2,4,256], index: 0, kind: input, shape index: {}]   ;;  %s2640_s1 = inlined_call_operand.vmem [shape: bf16[4,36], index: 1, kind: input, shape index: {}]   ;;  %s2641_s2 = inlined_call_operand.vmem [shape: f32[4,1], index: 2, kind: input, shape index: {}]   ;;  %s2642_s3 = inlined_call_operand.vmem [shape: bf16[4,4], index: 3, kind: input, shape index: {}]   ;;  %s2643_s4 = inlined_call_operand.vmem [shape: f32[4,1], index: 4, kind: input, shape index: {}]   ;;  %s2644_s5 = inlined_call_operand.vmem [shape: bf16[4,4], index: 5, kind: input, shape index: {}]   ;;  %s2645_s6 = inlined_call_operand.vmem [shape: f32[4,1], index: 6, kind: input, shape index: {}]   ;;  %s2646_s7 = inlined_call_operand.vmem [shape: bf16[16,18], index: 7, kind: input, shape index: {}]   ;;  %s2647_s8 = inlined_call_operand.vmem [shape: f32[16,1], index: 8, kind: input, shape index: {}]   ;;  %s2648_s9 = inlined_call_operand.vmem [shape: bf16[1,144], index: 9, kind: input, shape index: {}]   ;;  %s2649_s10 = inlined_call_operand.<no memory space> [shape: f32[1,1], index: 10, kind: input, shape index: {}]   ;;  %s2650_s11 = inlined_call_operand.hbm [shape: f32[2,4,256], index: 11, kind: output, shape index: {}]  }
   0x1   :  { %v16_v0 = vstv %s2649_s10 }
   0x2   :  { %17 = vst [vmem:[#allocation2] sm:$0x1] %v16_v0 }
   0x3   :  { %18 = vsyncpa [#allocation4], 0 }
   0x4   :  { %20 = vsyncpa [#allocation4 + $0x1], 0  ;;  %s2047_s19 = smov 0   ;;  %s2049_s20 = smov 0  }
   0x5   :  { %s2051_s21 = smov 0   ;;  %s2053_s22 = smov 0  }
   0x6 LB: > { %s2068_s10 = sadd.s32 4294967295, %s1963_s22   ;;  %s1557_s23 = sadd.s32 4294967294, %s1963_s22   ;;  %s1963_s22 = sphi %s2053_s22, %s2668_s22   ;;  %s1959_s21 = sphi %s2051_s21, %s2667_s21   ;;  %s1955_s20 = sphi %s2049_s20, %s2666_s20   ;;  %s1951_s19 = sphi %s2047_s19, %s2665_s19  }
   0x7   : > { %s2072_s24 = sadd.s32 1, %s1963_s22   ;;  %s269_s25 = sadd.s32 1, %s1959_s21 }
   0x8   : > { %s266_s26 = ssub.s32 %s1963_s22, %s2072_s24  ;;  %p279_p0 = scmp.ne.s32.totalorder %s1959_s21, %s1955_s20 }
   0x9   : > { %p267_p1 = scmp.eq.s32.totalorder %s266_s26, 0  ;;  %p280_p2 = scmp.eq.s32.totalorder %s2068_s10, 1 }
   0xa   : > { %p285_p3 = scmp.ne.s32.totalorder %s1955_s20, %s1951_s19  ;;  %p286_p4 = scmp.eq.s32.totalorder %s1557_s23, 1 }
   0xb   : > { %s2083_s27 = scalar_select %p267_p1, %s1959_s21, %s269_s25  }
   0xc   : > { %p2085_p5 = por %p280_p2, %p279_p0  ;;  %p2089_p6 = por %p286_p4, %p285_p3 }
   0xd   : > { %p1560_p7 = scmp.ge.s32.totalorder %s1963_s22, 1  ;;  %p342_p8 = scmp.lt.s32.totalorder %s1963_s22, 3 }
   0xf   : > { %p343_p9 = pnand %p1560_p7, %p342_p8 }
  0x10   : > { %p382_p10 = scmp.lt.s32.totalorder (!%p343_p9), %s2068_s10, 1  ;;  %v389_v1 = vlaneseq (!%p343_p9)  ;;  %s1965_s16 = smov (!%p343_p9), 17   ;;  %v1966_v8 = vmov (!%p343_p9), 0.0   ;;  %vm434_vm4 = vcmask (!%p343_p9), 138240   ;;  %vm449_vm5 = vcmask (!%p343_p9), 15360  }
  0x11   : > { %346 = sbr.rel (%p343_p9) target bundleno = 2437 (0x985), region = 64  ;;  %s1967_s17 = smov (!%p343_p9), 16   ;;  %vm475_vm6 = vcmask (!%p343_p9), 146432   ;;  %vm487_vm7 = vcmask (!%p343_p9), 261120   ;;  %vm463_vm8 = vcmask (!%p343_p9), 130048   ;;  %vm499_vm9 = vcmask (!%p343_p9), 277504  }
  0x12   : > { %v390_v2 = vand.u32 (!%p343_p9), 127, %v389_v1  ;;  %s1968_s18 = smov (!%p343_p9), 18   ;;  %s1969_s23 = smov (!%p343_p9), 2   ;;  %vm602_vm10 = vcmask (!%p343_p9), 777216   ;;  %vm560_vm11 = vcmask (!%p343_p9), 908288   ;;  %vm591_vm12 = vcmask (!%p343_p9), 785408  }
  0x13   : > { %s1970_s25 = smov (!%p343_p9), 34   ;;  %s1971_s26 = smov (!%p343_p9), 32   ;;  %vm577_vm13 = vcmask (!%p343_p9), 900096   ;;  %vm621_vm14 = vcmask (!%p343_p9), 1043456   ;;  %vm518_vm15 = vcmask (!%p343_p9), 1039360  }
  0x14   : > { %v391_v3 = vadd.s32 (!%p343_p9), 128, %v390_v2  ;;  %v396_v4 = vand.u32 (!%p343_p9), 15, %v390_v2  ;;  %s1974_s13 = smov (!%p343_p9), 126   ;;  %s1975_s14 = smov (!%p343_p9), 95  }
  0x16   : > { %v403_v6 = vand.u32 (!%p343_p9), 15, %v391_v3  ;;  %vm422_vm0 = vcmp.ne.s32.totalorder (!%p343_p9), %v396_v4, 0  ;;  %vm416_vm1 = vcmp.ne.s32.totalorder (!%p343_p9), %v396_v4, 15 }
  0x17   : > { %v2103_v9 = vsel (!%p343_p9), %vm422_vm0, 1.0, %v1966_v8  ;;  %v1564_v10 = vsel (!%p343_p9), %vm416_vm1, 1.0, %v1966_v8  ;;  %vm532_vm0 = vcmask (!%p343_p9), 1031168   ;;  %vm549_vm1 = vcmask (!%p343_p9), 916480  }
  0x18   : > { %s383_s30 = scalar_select %p382_p10, %s2068_s10, 1  ;;  %vm423_vm2 = vcmp.ne.s32.totalorder %v403_v6, 0  ;;  %vm417_vm3 = vcmp.ne.s32.totalorder %v403_v6, 15 }
  0x19   : > { %v2107_v11 = vsel %vm423_vm2, 1.0, %v1966_v8  ;;  %v1565_v12 = vsel %vm417_vm3, 1.0, %v1966_v8  ;;  %vm616_vm2 = vcmask 769024   ;;  %vm647_vm3 = vcmask 1041408  }
  0x1a   : > { %s1585_s12 = sshll.u32 %s383_s30, 3  ;;  %v1660_v13 = vpack.i.bf16 %v2107_v11, %v2103_v9  ;;  %v1670_v14 = vpack.i.bf16 %v1565_v12, %v1564_v10  ;;  %s1972_s30 = smov 127   ;;  %v637_v12 = vld [vmem:[%s2641_s2] sm:$0xf] }
  0x1b   : > { %s386_s15 = scalar_lea.vmem %s2639_s0, %s1585_s12  ;;  %s2653_s12 = smov 112  }
  0x1c   : > { %v388_v5 = vld [vmem:[%s386_s15] sm:$0xff]  ;;  %1661 = vrot.lane.b32.xlu1 %v1660_v13, %s1967_s17  ;;  %s1976_s15 = smov 111   ;;  %s2655_s17 = smov 110  }
  0x1d   : > { %430 = vrot.lane.b32.xlu0 %v388_v5, %s1965_s16  ;;  %v429_v7 = vcombine.high %v388_v5, %v388_v5 }
  0x20   : > { %1666 = vrot.lane.b32.xlu1 %v1670_v14, %s1969_s23  ;;  %s2651_s23 = smov 94  }
  0x21   : > { %432 = vrot.lane.b32.xlu0 %v429_v7, %s1965_s16  ;;  %v1980_v7 = vmov 0  }
  0x22   : > { %686 = vmatprep.mubr.bf16.mxu0 %v1980_v7  ;;  %1725 = vset.pattern.permute.xlu1 %v1980_v7 }
  0x23   : > { %1726 = vset.pattern.permute.xlu0 %v1980_v7 }
  0x24   : > { %1676 = vrot.lane.b32.xlu1 %v1660_v13, %s1971_s26  ;;  %s2662_s26 = smov 94  }
  0x25   : > { %1671 = vrot.lane.b32.xlu0 %v1670_v14, %s1968_s18  ;;  %s2657_s18 = smov 96  }
  0x29   : > { %1681 = vrot.lane.b32.xlu0 %v1670_v14, %s1970_s25  ;;  %s2661_s25 = smov 112  }
  0x8e   : > { %v1662_v19 = vpop.permute.xlu1 %1661 }
  0x8f   : > { %v431_v15 = vpop.permute.xlu0 %430  ;;  %v2120_v20 = vunpack.i.l.bf16 %v1662_v19  ;;  %v2147_v36 = vunpack.i.h.bf16 %v1662_v19 }
  0x90   : > { %v2114_v16 = vsel %vm434_vm4, 0.0, %v431_v15 }
  0x91   : > { %v509_v17 = vrot.slane %v2114_v16, 4  ;;  %v468_v24 = vmul.f32 %v2120_v20, %v2114_v16  ;;  %v2173_v45 = vsel %vm463_vm8, %v2120_v20, %v2147_v36 }
  0x92   : > { %v1667_v27 = vpop.permute.xlu1 %1666 }
  0x93   : > { %v433_v18 = vpop.permute.xlu0 %432  ;;  %512 = vrot.lane.b32.xlu0 %v509_v17, %s1972_s30  ;;  %v2132_v28 = vunpack.i.h.bf16 %v1667_v27  ;;  %v2134_v29 = vunpack.i.l.bf16 %v1667_v27  ;;  %v540_v30 = vrot.slane %v468_v24, 4 }
  0x94   : > { %v2123_v21 = vsel %vm434_vm4, %v431_v15, %v433_v18  ;;  %v2126_v22 = vsel %vm434_vm4, %v433_v18, 0.0 }
  0x95   : > { %v510_v25 = vrot.slane %v2123_v21, 4  ;;  %v511_v26 = vrot.slane %v2126_v22, 4  ;;  %v454_v33 = vmul.f32 %v2134_v29, %v2114_v16  ;;  %v2145_v35 = vsel %vm449_vm5, %v2134_v29, %v2132_v28 }
  0x96   : > { %v1677_v37 = vpop.permute.xlu1 %1676  ;;  %v455_v40 = vmul.f32 %v2145_v35, %v2123_v21  ;;  %v456_v41 = vmul.f32 %v2132_v28, %v2126_v22  ;;  %v1685_v43 = vpack.i.bf16 %v2126_v22, %v2123_v21  ;;  %v469_v52 = vmul.f32 %v2173_v45, %v2123_v21 }
  0x97   : > { %v1672_v23 = vpop.permute.xlu0 %1671  ;;  %543 = vrot.lane.b32.xlu0 %v540_v30, %s2653_s12  ;;  %v1695_v34 = vpack.i.bf16 %v511_v26, %v510_v25  ;;  %v2149_v38 = vunpack.i.h.bf16 %v1677_v37  ;;  %v2151_v39 = vunpack.i.l.bf16 %v1677_v37  ;;  %526 = vrot.lane.b32.xlu1 %v454_v33, %s1974_s13  ;;  %v470_v53 = vmul.f32 %v2147_v36, %v2126_v22 }
  0x98   : > { %v2136_v31 = vunpack.i.h.bf16 %v1672_v23  ;;  %v2138_v32 = vunpack.i.l.bf16 %v1672_v23  ;;  %v1700_v46 = vpack.i.bf16 %v456_v41, %v455_v40  ;;  %v541_v58 = vrot.slane %v469_v52, 4 }
  0x99   : > { %v2168_v44 = vsel %vm487_vm7, %v2151_v39, %v2149_v38  ;;  %v494_v51 = vmul.f32 %v2149_v38, %v2126_v22  ;;  %v542_v59 = vrot.slane %v470_v53, 4  ;;  %v492_v4 = vmul.f32 %v2151_v39, %v2114_v16 }
  0x9a   : > { %v2161_v42 = vsel %vm475_vm6, %v2138_v32, %v2136_v31  ;;  %v480_v47 = vmul.f32 %v2138_v32, %v2114_v16  ;;  %v482_v49 = vmul.f32 %v2136_v31, %v2126_v22  ;;  %v493_v50 = vmul.f32 %v2168_v44, %v2123_v21 }
  0x9b   : > { %1696 = vrot.lane.b32.xlu0 %v1695_v34, %s1975_s14  ;;  %1686 = vrot.lane.b32.xlu1 %v1685_v43, %s1976_s15  ;;  %v481_v48 = vmul.f32 %v2161_v42, %v2123_v21  ;;  %v1682_v60 = vpop.permute.xlu0 %1681  ;;  %v1710_v62 = vpack.i.bf16 %v542_v59, %v541_v58  ;;  %v442_v27 = vmul.f32 %v2107_v11, %v2123_v21  ;;  %vm643_vm5 = vcmask 293888  }
  0x9c   : > { %v568_v54 = vrot.slane %v480_v47, 4  ;;  %v570_v56 = vrot.slane %v482_v49, 4  ;;  %v1705_v57 = vpack.i.bf16 %v494_v51, %v493_v50  ;;  %v2195_v63 = vunpack.i.h.bf16 %v1682_v60 }
  0x9d   : > { %v569_v55 = vrot.slane %v481_v48, 4  ;;  %v2197_v0 = vunpack.i.l.bf16 %v1682_v60  ;;  %vm1981_vm7 = vmmov 0  }
  0x9e   : > { %v506_v3 = vmul.f32 %v2195_v63, %v2126_v22 }
  0x9f   : > { %1701 = vrot.lane.b32.xlu0 %v1700_v46, %s1974_s13  ;;  %1691 = vrot.lane.b32.xlu1 %v1695_v34, %s1972_s30  ;;  %v1715_v61 = vpack.i.bf16 %v570_v56, %v569_v55  ;;  %v2205_v2 = vsel %vm499_vm9, %v2197_v0, %v2195_v63  ;;  %v504_v5 = vmul.f32 %v2197_v0, %v2114_v16  ;;  %vm707_vm9 = vcmask 7168  }
  0xa0   : > { %v505_v6 = vmul.f32 %v2205_v2, %v2123_v21 }
  0xa2   : > { %v1720_v10 = vpack.i.bf16 %v505_v6, %v504_v5 }
  0xa3   : > { %571 = vrot.lane.b32.xlu0 %v568_v54, %s2655_s17  ;;  %1706 = vrot.lane.b32.xlu1 %v1705_v57, %s2657_s18  ;;  %v441_v57 = vmul.f32 %v2103_v9, %v2114_v16 }
  0xa7   : > { %1716 = vrot.lane.b32.xlu0 %v1715_v61, %s2655_s17  ;;  %1711 = vrot.lane.b32.xlu1 %v1710_v62, %s2653_s12 }
  0xab   : > { %596 = vrot.lane.b32.xlu0 %v509_v17, %s1975_s14  ;;  %554 = vrot.lane.b32.xlu1 %v2114_v16, %s1976_s15 }
  0xaf   : > { %614 = vrot.lane.b32.xlu0 %v506_v3, %s2651_s23  ;;  %585 = vrot.lane.b32.xlu1 %v492_v4, %s2657_s18 }
  0xb3   : > { %1721 = vrot.lane.b32.xlu1 %v1720_v10, %s2651_s23 }
  0xb7   : > { %640 = vperm.xlu1 %1725, %v637_v12  }
 0x105   : > { %v513_v13 = vpop.permute.xlu0 %512 }
 0x109   : > { %v544_v14 = vpop.permute.xlu0 %543  ;;  %v527_v15 = vpop.permute.xlu1 %526 }
 0x10d   : > { %v1697_v17 = vpop.permute.xlu0 %1696  ;;  %v1687_v18 = vpop.permute.xlu1 %1686 }
 0x10e   : > { %v1689_v30 = vunpack.i.h.bf16 %v1687_v18  ;;  %v1688_v33 = vunpack.i.l.bf16 %v1687_v18  ;;  %v1699_v48 = vunpack.i.h.bf16 %v1697_v17  ;;  %v1698_v49 = vunpack.i.l.bf16 %v1697_v17 }
 0x110   : > { %v562_v55 = vsel %vm560_vm11, %v1688_v33, %v1689_v30  ;;  %v604_v16 = vsel %vm602_vm10, %v1698_v49, %v1699_v48  ;;  %v636_v48 = vld [vmem:[%s2640_s1] sm:$0x3] }
 0x111   : > { %v1702_v19 = vpop.permute.xlu0 %1701  ;;  %v1692_v22 = vpop.permute.xlu1 %1691 }
 0x112   : > { %v1694_v24 = vunpack.i.h.bf16 %v1692_v22  ;;  %v1693_v25 = vunpack.i.l.bf16 %v1692_v22  ;;  %v1704_v34 = vunpack.i.h.bf16 %v1702_v19  ;;  %v1703_v37 = vunpack.i.l.bf16 %v1702_v19 }
 0x114   : > { %v520_v51 = vsel %vm518_vm15, %v1693_v25, %v1694_v24  ;;  %v519_v54 = vsel %vm518_vm15, %v513_v13, %v1693_v25  ;;  %v534_v56 = vsel %vm532_vm0, %v1703_v37, %v1704_v34  ;;  %v533_v58 = vsel %vm532_vm0, %v527_v15, %v1703_v37 }
 0x115   : > { %v572_v23 = vpop.permute.xlu0 %571  ;;  %v1707_v26 = vpop.permute.xlu1 %1706  ;;  %v623_v61 = vsel %vm621_vm14, %v442_v27, %v520_v51  ;;  %v622_v5 = vsel %vm621_vm14, %v441_v57, %v519_v54 }
 0x116   : > { %v1709_v41 = vunpack.i.h.bf16 %v1707_v26  ;;  %v1708_v43 = vunpack.i.l.bf16 %v1707_v26 }
 0x118   : > { %v593_v59 = vsel %vm591_vm12, %v1708_v43, %v1709_v41 }
 0x119   : > { %v1717_v40 = vpop.permute.xlu0 %1716  ;;  %v1712_v50 = vpop.permute.xlu1 %1711  ;;  %v629_v17 = vsel %vm621_vm14, %v593_v59, %v604_v16 }
 0x11a   : > { %v1719_v46 = vunpack.i.h.bf16 %v1717_v40  ;;  %v1718_v47 = vunpack.i.l.bf16 %v1717_v40  ;;  %v1714_v52 = vunpack.i.h.bf16 %v1712_v50  ;;  %v1713_v53 = vunpack.i.l.bf16 %v1712_v50 }
 0x11c   : > { %v579_v21 = vsel %vm577_vm13, %v1718_v47, %v1719_v46  ;;  %v551_v60 = vsel %vm549_vm1, %v1713_v53, %v1714_v52  ;;  %v550_v62 = vsel %vm549_vm1, %v544_v14, %v1713_v53  ;;  %v578_v24 = vsel %vm577_vm13, %v572_v23, %v1718_v47 }
 0x11d   : > { %v555_v3 = vpop.permute.xlu1 %554  ;;  %v625_v4 = vsel %vm621_vm14, %v534_v56, %v551_v60  ;;  %v624_v6 = vsel %vm621_vm14, %v533_v58, %v550_v62  ;;  %v627_v10 = vsel %vm621_vm14, %v562_v55, %v579_v21  ;;  %v597_v15 = vpop.permute.xlu0 %596  ;;  %v711_v62 = vld [vmem:[%s2643_s4] sm:$0xf] }
 0x11e   : > { %v631_v12 = vpack.c.bf16 %v625_v4, %v623_v61  ;;  %v630_v13 = vpack.c.bf16 %v624_v6, %v622_v5  ;;  %v561_v18 = vsel %vm560_vm11, %v555_v3, %v1688_v33  ;;  %v633_v14 = vpack.c.bf16 %v629_v17, %v627_v10  ;;  %v767_v61 = vld [vmem:[%s2645_s6] sm:$0xf] }
 0x11f   : > { %v603_v22 = vsel %vm602_vm10, %v597_v15, %v1698_v49  ;;  %v626_v26 = vsel %vm621_vm14, %v561_v18, %v578_v24 }
 0x120   : > { %654 = vmatprep.subr.bf16.mxu0 %v631_v12  ;;  %v710_v12 = vld [vmem:[%s2642_s3] sm:$0x3] }
 0x121   : > { %v586_v19 = vpop.permute.xlu1 %585  ;;  %655 = vmatpush1.bf16.msra.mxu0 %v630_v13  ;;  %v615_v40 = vpop.permute.xlu0 %614 }
 0x122   : > { %v592_v25 = vsel %vm591_vm12, %v586_v19, %v1708_v43  ;;  %656 = vmatprep.subr.bf16.mxu0 %v633_v14 }
 0x123   : > { %v628_v27 = vsel %vm621_vm14, %v592_v25, %v603_v22 }
 0x124   : > { %v632_v30 = vpack.c.bf16 %v628_v27, %v626_v26  ;;  %v765_v26 = vld [vmem:[%s2644_s5] sm:$0x3] }
 0x125   : > { %v1722_v34 = vpop.permute.xlu1 %1721 }
 0x126   : > { %v1724_v37 = vunpack.i.h.bf16 %v1722_v34  ;;  %v1723_v33 = vunpack.i.l.bf16 %v1722_v34  ;;  %657 = vmatpush1.bf16.msra.mxu0 %v632_v30 }
 0x128   : > { %v618_v41 = vsel %vm616_vm2, %v1724_v37, %v615_v40  ;;  %v617_v46 = vsel %vm616_vm2, %v1723_v33, %v1724_v37 }
 0x129   : > { %v635_v23 = vpack.c.bf16 %v618_v41, %v618_v41  ;;  %v634_v47 = vpack.c.bf16 %v617_v46, %v617_v46 }
 0x12b   : > { %1568 = vmatprep.subr.msk.bf16.mxu0 %vm647_vm3, %v635_v23  ;;  %v649_v43 = vsel %vm647_vm3, %v634_v47, 0 }
 0x12c   : > { %659 = vmatpush1.bf16.msra.mxu0 %v649_v43 }
 0x12d   : > { %1591 = vmatprep.subr.bf16.mxu0 %v1966_v8 }
 0x12f   : > { %1569 = vmatmul.mubr.msk.bf16.vlgmr.msra.gmra.mrb[0].mxu0 %vm643_vm5, %v636_v48  ;;  %vm717_vm5 = vcmask 31744  }
 0x130   : > { %1593 = vmatprep.mubr.msk.bf16.mxu0 %vm1981_vm7, %v1966_v8 }
 0x136   : > { %v641_v49 = vpop.permute.xlu1 %640 }
 0x202   : > { %v688_v50 = vpop.f32.mrb[0].mxu0 }
 0x203   : > { %v689_v51 = vadd.f32 %v688_v50, %v641_v49  ;;  %v690_v21 = vpop.f32.mrb[1].mxu0 }
 0x204   : > { %v691_v52 = vadd.f32 %v690_v21, %v641_v49  ;;  %v692_v53 = vpop.f32.mrb[2].mxu0 }
 0x205   : > { %v693_v54 = vpop.f32.mrb[3].mxu0  ;;  %v702_v55 = vsel %vm621_vm14, %v689_v51, -inf  ;;  %v695_v56 = vsel %vm621_vm14, %v689_v51, 0.0 }
 0x206   : > { %v703_v57 = vsel %vm621_vm14, %v691_v52, -inf  ;;  %v696_v58 = vsel %vm621_vm14, %v691_v52, 0.0 }
 0x207   : > { %v704_v59 = vmax.f32 %v702_v55, %v703_v57  ;;  %v697_v60 = vadd.f32 %v696_v58, %v695_v56 }
 0x209   : > { %705 = vmax.xlane.f32.xlu1 %v704_v59  ;;  %698 = vadd.xlane.f32.xlu0 %v697_v60 }
 0x21a   : > { %770 = vperm.xlu1 %1725, %v767_v61  }
 0x21f   : > { %714 = vperm.xlu0 %1726, %v711_v62  }
 0x296   : > { %v699_v3 = vpop.xlane.xlu0 %698  ;;  %v706_v5 = vpop.xlane.xlu1 %705 }
 0x297   : > { %v701_v4 = vmul.f32 0.00390625, %v699_v3 }
 0x299   : > { %v708_v6 = vsel %vm707_vm9, %v701_v4, %v706_v5  ;;  %vm1019_vm9 = vcmask 1045504  }
 0x29a   : > { %v709_v10 = vpack.c.bf16 %v708_v6, %v708_v6  ;;  %v771_v27 = vpop.permute.xlu1 %770 }
 0x29c   : > { %v722_v16 = vsel %vm647_vm3, %v709_v10, 0 }
 0x29d   : > { %1592 = vmatpush3.bf16.msra.mxu0 %v722_v16 }
 0x29e   : > { %1597 = vmatprep.subr.bf16.mxu0 %v1966_v8  ;;  %v715_v13 = vpop.permute.xlu0 %714 }
 0x2a0   : > { %1594 = vmatmul.mubr.msk.bf16.vlgmr.msra.gmra.mrb[4].mxu0 %vm717_vm5, %v710_v12 }
 0x2a1   : > { %1599 = vmatprep.mubr.msk.bf16.mxu0 %vm1981_vm7, %v1966_v8  ;;  %vm868_vm7 = vcmask 1040384  }
 0x373   : > { %v758_v15 = vpop.f32.mrb[4].mxu0 }
 0x374   : > { %v759_v17 = vadd.f32 %v758_v15, %v715_v13  ;;  %v1595_v18 = vpop.f32.mrb[5].mxu0 }
 0x375   : > { %v761_v14 = vpop.f32.mrb[6].mxu0 }
 0x376   : > { %v764_v19 = vmax.f32 %v759_v17, 0.0  ;;  %v1596_v22 = vpop.f32.mrb[7].mxu0 }
 0x378   : > { %v766_v24 = vpack.c.bf16 %v764_v19, %v764_v19 }
 0x37a   : > { %v777_v25 = vsel %vm647_vm3, %v766_v24, 0 }
 0x37b   : > { %1598 = vmatpush3.bf16.msra.mxu0 %v777_v25 }
 0x37e   : > { %1600 = vmatmul.mubr.msk.bf16.vlgmr.msra.gmra.mrb[8].mxu0 %vm717_vm5, %v765_v26 }
 0x37f   : > { %1092 = vmatprep.mubr.bf16.mxu0 %v1980_v7 }
 0x451   : > { %v813_v8 = vpop.f32.mrb[8].mxu0 }
 0x452   : > { %v814_v30 = vadd.f32 %v813_v8, %v771_v27  ;;  %v1601_v34 = vpop.f32.mrb[9].mxu0 }
 0x453   : > { %v816_v37 = vpop.f32.mrb[10].mxu0 }
 0x454   : > { %820 = vrot.lane.b32.xlu1 %v814_v30, %s1972_s30  ;;  %v1602_v33 = vpop.f32.mrb[11].mxu0 }
 0x4c6   : > { %v821_v40 = vpop.permute.xlu1 %820 }
 0x4c7   : > { %v823_v41 = vadd.f32 %v821_v40, %v814_v30 }
 0x4c9   : > { %v1572_v46 = vmul.f32 -1.442695, %v823_v41 }
 0x4cb   : > { %1889 = vpow2.f32 %v1572_v46 }
 0x4d5   : > { %v1890_v23 = vpop.eup %1889 }
 0x4d6   : > { %v827_v47 = vadd.f32 1.0, %v1890_v23 }
 0x4d8   : > { %1891 = vrcp.f32 %v827_v47 }
 0x4e2   : > { %v1892_v43 = vpop.eup %1891 }
 0x4e3   : > { %832 = vperm.xlu1 %1725, %v1892_v43  }
 0x562   : > { %v833_v48 = vpop.permute.xlu1 %832 }
 0x563   : > { %v2285_v49 = vmul.f32 %v833_v48, %v689_v51  ;;  %v2287_v7 = vmul.f32 %v833_v48, %v691_v52 }
 0x565   : > { %v837_v50 = vsel %vm621_vm14, %v2285_v49, 0.0  ;;  %v844_v21 = vsel %vm621_vm14, %v2287_v7, 0.0  ;;  %v854_v53 = vsel %vm621_vm14, %v2285_v49, -inf  ;;  %v861_v54 = vsel %vm621_vm14, %v2287_v7, -inf }
 0x566   : > { %v838_v55 = vrot.slane %v837_v50, 4  ;;  %v845_v56 = vrot.slane %v844_v21, 4  ;;  %v855_v57 = vrot.slane %v854_v53, 4  ;;  %v862_v58 = vrot.slane %v861_v54, 4 }
 0x568   : > { %v839_v51 = vadd.f32 %v838_v55, %v837_v50  ;;  %v846_v59 = vadd.f32 %v845_v56, %v844_v21  ;;  %v856_v52 = vmax.f32 %v854_v53, %v855_v57  ;;  %v863_v60 = vmax.f32 %v861_v54, %v862_v58 }
 0x56a   : > { %v840_v61 = vrot.slane %v839_v51, 2  ;;  %v847_v62 = vrot.slane %v846_v59, 2  ;;  %v857_v3 = vrot.slane %v856_v52, 2  ;;  %v864_v4 = vrot.slane %v863_v60, 2 }
 0x56c   : > { %v841_v5 = vadd.f32 %v840_v61, %v839_v51  ;;  %v858_v6 = vmax.f32 %v856_v52, %v857_v3  ;;  %v848_v10 = vadd.f32 %v847_v62, %v846_v59  ;;  %v865_v15 = vmax.f32 %v863_v60, %v864_v4 }
 0x56e   : > { %v842_v16 = vrot.slane %v841_v5, 1  ;;  %v859_v12 = vrot.slane %v858_v6, 1  ;;  %v849_v13 = vrot.slane %v848_v10, 1  ;;  %v866_v22 = vrot.slane %v865_v15, 1 }
 0x570   : > { %v843_v17 = vadd.f32 %v842_v16, %v841_v5  ;;  %v850_v18 = vadd.f32 %v849_v13, %v848_v10  ;;  %v860_v19 = vmax.f32 %v858_v6, %v859_v12  ;;  %v867_v26 = vmax.f32 %v865_v15, %v866_v22 }
 0x572   : > { %v852_v14 = vmul.f32 0.25, %v843_v17  ;;  %v853_v25 = vmul.f32 0.25, %v850_v18 }
 0x574   : > { %v869_v24 = vsel %vm868_vm7, %v852_v14, %v860_v19  ;;  %v870_v27 = vsel %vm868_vm7, %v853_v25, %v867_v26 }
 0x575   : > { %873 = vrot.lane.b32.xlu1 %v869_v24, %s1965_s16 }
 0x579   : > { %875 = vrot.lane.b32.xlu1 %v870_v27, %s1965_s16 }
 0x5e7   : > { %v874_v8 = vpop.permute.xlu1 %873 }
 0x5e8   : > { %v2315_v55 = vsel %vm434_vm4, 0.0, %v874_v8 }
 0x5e9   : > { %v891_v58 = vmul.f32 %v2138_v32, %v2315_v55  ;;  %v885_v52 = vmul.f32 %v2134_v29, %v2315_v55  ;;  %v902_v60 = vrot.slane %v2315_v55, 6  ;;  %v894_v6 = vmul.f32 %v2151_v39, %v2315_v55 }
 0x5ea   : > { %v888_v15 = vmul.f32 %v2120_v20, %v2315_v55  ;;  %v897_v26 = vmul.f32 %v2197_v0, %v2315_v55  ;;  %v989_v27 = vrot.slane %v2315_v55, 2 }
 0x5eb   : > { %v876_v30 = vpop.permute.xlu1 %875  ;;  %v960_v61 = vrot.slane %v891_v58, 6  ;;  %v918_v5 = vrot.slane %v885_v52, 4  ;;  %v976_v18 = vrot.slane %v894_v6, 4 }
 0x5ec   : > { %v2302_v34 = vsel %vm434_vm4, %v874_v8, %v876_v30  ;;  %v882_v37 = vsel %vm434_vm4, %v876_v30, 0.0  ;;  %v934_v24 = vrot.slane %v888_v15, 2  ;;  %v1034_v30 = vld [vmem:[%s2647_s8] sm:$0xff] }
 0x5ed   : > { %v1727_v33 = vpack.i.bf16 %v882_v37, %v2302_v34  ;;  %v892_v40 = vmul.f32 %v2302_v34, %v2161_v42  ;;  %v893_v41 = vmul.f32 %v2136_v31, %v882_v37  ;;  %v886_v46 = vmul.f32 %v2302_v34, %v2145_v35 }
 0x5ee   : > { %v887_v23 = vmul.f32 %v2132_v28, %v882_v37  ;;  %v903_v48 = vrot.slane %v2302_v34, 6  ;;  %v904_v21 = vrot.slane %v882_v37, 6  ;;  %v990_v51 = vrot.slane %v2302_v34, 2 }
 0x5ef   : > { %1728 = vrot.lane.b32.xlu1 %v1727_v33, %s1976_s15  ;;  %v961_v47 = vrot.slane %v892_v40, 6  ;;  %v962_v43 = vrot.slane %v893_v41, 6  ;;  %v919_v53 = vrot.slane %v886_v46, 4  ;;  %v991_v59 = vrot.slane %v882_v37, 2  ;;  %v1035_v40 = vld [vmem:[%s2647_s8 + $0x8] sm:$0xff] }
 0x5f0   : > { %v920_v54 = vrot.slane %v887_v23, 4  ;;  %v1732_v56 = vpack.i.bf16 %v904_v21, %v903_v48  ;;  %v895_v62 = vmul.f32 %v2302_v34, %v2168_v44  ;;  %v896_v3 = vmul.f32 %v2149_v38, %v882_v37 }
 0x5f1   : > { %v1742_v50 = vpack.i.bf16 %v962_v43, %v961_v47  ;;  %v1737_v4 = vpack.i.bf16 %v991_v59, %v990_v51  ;;  %v889_v12 = vmul.f32 %v2302_v34, %v2173_v45  ;;  %v890_v13 = vmul.f32 %v2147_v36, %v882_v37 }
 0x5f2   : > { %v1747_v57 = vpack.i.bf16 %v920_v54, %v919_v53  ;;  %v977_v10 = vrot.slane %v895_v62, 4  ;;  %v978_v16 = vrot.slane %v896_v3, 4  ;;  %v898_v25 = vmul.f32 %v2302_v34, %v2205_v2 }
 0x5f3   : > { %947 = vrot.lane.b32.xlu1 %v2315_v55, %s1976_s15  ;;  %1743 = vrot.lane.b32.xlu0 %v1742_v50, %s2655_s17  ;;  %v935_v14 = vrot.slane %v889_v12, 2  ;;  %v936_v19 = vrot.slane %v890_v13, 2  ;;  %v899_v33 = vmul.f32 %v2195_v63, %v882_v37  ;;  %v883_v13 = vmul.f32 %v2103_v9, %v2315_v55 }
 0x5f4   : > { %v1752_v17 = vpack.i.bf16 %v978_v16, %v977_v10  ;;  %v1762_v8 = vpack.i.bf16 %v898_v25, %v897_v26 }
 0x5f5   : > { %v1757_v22 = vpack.i.bf16 %v936_v19, %v935_v14 }
 0x5f7   : > { %1733 = vrot.lane.b32.xlu1 %v1732_v56, %s1972_s30  ;;  %1748 = vrot.lane.b32.xlu0 %v1747_v57, %s1974_s13 }
 0x5fb   : > { %905 = vrot.lane.b32.xlu1 %v902_v60, %s1972_s30  ;;  %963 = vrot.lane.b32.xlu0 %v960_v61, %s2655_s17  ;;  %v884_v61 = vmul.f32 %v2107_v11, %v2302_v34 }
 0x5ff   : > { %1738 = vrot.lane.b32.xlu1 %v1737_v4, %s1975_s14  ;;  %921 = vrot.lane.b32.xlu0 %v918_v5, %s1974_s13 }
 0x603   : > { %1753 = vrot.lane.b32.xlu1 %v1752_v17, %s2657_s18  ;;  %979 = vrot.lane.b32.xlu0 %v976_v18, %s2657_s18 }
 0x607   : > { %1758 = vrot.lane.b32.xlu1 %v1757_v22, %s2661_s25  ;;  %937 = vrot.lane.b32.xlu0 %v934_v24, %s2661_s25 }
 0x60b   : > { %992 = vrot.lane.b32.xlu1 %v989_v27, %s1975_s14  ;;  %1763 = vrot.lane.b32.xlu0 %v1762_v8, %s2662_s26 }
 0x60f   : > { %1009 = vrot.lane.b32.xlu1 %v899_v33, %s2662_s26  ;;  %1038 = vperm.xlu0 %1726, %v1034_v30  }
 0x613   : > { %1043 = vperm.xlu1 %1725, %v1035_v40  }
 0x661   : > { %v1729_v41 = vpop.permute.xlu1 %1728 }
 0x662   : > { %v1731_v58 = vunpack.i.h.bf16 %v1729_v41  ;;  %v1730_v51 = vunpack.i.l.bf16 %v1729_v41 }
 0x664   : > { %v954_v10 = vsel %vm560_vm11, %v1730_v51, %v1731_v58 }
 0x665   : > { %v948_v46 = vpop.permute.xlu1 %947  ;;  %v1744_v23 = vpop.permute.xlu0 %1743 }
 0x666   : > { %v1746_v37 = vunpack.i.h.bf16 %v1744_v23  ;;  %v1745_v57 = vunpack.i.l.bf16 %v1744_v23  ;;  %v953_v30 = vsel %vm560_vm11, %v948_v46, %v1730_v51 }
 0x668   : > { %v970_v4 = vsel %vm577_vm13, %v1745_v57, %v1746_v37 }
 0x669   : > { %v1734_v47 = vpop.permute.xlu1 %1733  ;;  %v1749_v43 = vpop.permute.xlu0 %1748  ;;  %v1023_v14 = vsel %vm647_vm3, %v954_v10, %v970_v4 }
 0x66a   : > { %v1736_v21 = vunpack.i.h.bf16 %v1734_v47  ;;  %v1735_v53 = vunpack.i.l.bf16 %v1734_v47  ;;  %v1751_v59 = vunpack.i.h.bf16 %v1749_v43  ;;  %v1750_v52 = vunpack.i.l.bf16 %v1749_v43 }
 0x66c   : > { %v912_v60 = vsel %vm518_vm15, %v1735_v53, %v1736_v21  ;;  %v928_v12 = vsel %vm532_vm0, %v1750_v52, %v1751_v59 }
 0x66d   : > { %v906_v48 = vpop.permute.xlu1 %905  ;;  %v964_v50 = vpop.permute.xlu0 %963  ;;  %v1016_v16 = vsel %vm647_vm3, %v884_v61, %v912_v60 }
 0x66e   : > { %v911_v15 = vsel %vm518_vm15, %v906_v48, %v1735_v53  ;;  %v969_v19 = vsel %vm577_vm13, %v964_v50, %v1745_v57  ;;  %v1018_v40 = vsel %vm621_vm14, %v1016_v16, %v928_v12 }
 0x66f   : > { %v1015_v33 = vsel %vm647_vm3, %v883_v13, %v911_v15  ;;  %v1022_v41 = vsel %vm647_vm3, %v953_v30, %v969_v19 }
 0x671   : > { %v1739_v54 = vpop.permute.xlu1 %1738  ;;  %v922_v56 = vpop.permute.xlu0 %921 }
 0x672   : > { %v1741_v17 = vunpack.i.h.bf16 %v1739_v54  ;;  %v1740_v18 = vunpack.i.l.bf16 %v1739_v54  ;;  %v927_v22 = vsel %vm532_vm0, %v922_v56, %v1750_v52 }
 0x673   : > { %v1017_v48 = vsel %vm621_vm14, %v1015_v33, %v927_v22 }
 0x674   : > { %v999_v23 = vsel %vm602_vm10, %v1740_v18, %v1741_v17 }
 0x675   : > { %v1754_v62 = vpop.permute.xlu1 %1753  ;;  %v980_v3 = vpop.permute.xlu0 %979 }
 0x676   : > { %v1756_v5 = vunpack.i.h.bf16 %v1754_v62  ;;  %v1755_v6 = vunpack.i.l.bf16 %v1754_v62 }
 0x678   : > { %v986_v34 = vsel %vm591_vm12, %v1755_v6, %v1756_v5  ;;  %v985_v26 = vsel %vm591_vm12, %v980_v3, %v1755_v6  ;;  %v1888_v6 = vld [vmem:[%s2646_s7] sm:$0xff]  }
 0x679   : > { %v1759_v24 = vpop.permute.xlu1 %1758  ;;  %v938_v25 = vpop.permute.xlu0 %937  ;;  %v1025_v55 = vsel %vm621_vm14, %v1023_v14, %v986_v34  ;;  %v1024_v50 = vsel %vm621_vm14, %v1022_v41, %v985_v26 }
 0x67a   : > { %v1761_v27 = vunpack.i.h.bf16 %v1759_v24  ;;  %v1760_v8 = vunpack.i.l.bf16 %v1759_v24  ;;  %v1027_v54 = vsel %vm1019_vm9, %v1025_v55, %v999_v23 }
 0x67c   : > { %v944_v47 = vsel %vm549_vm1, %v1760_v8, %v1761_v27  ;;  %v943_v43 = vsel %vm549_vm1, %v938_v25, %v1760_v8 }
 0x67d   : > { %v993_v21 = vpop.permute.xlu1 %992  ;;  %v1764_v53 = vpop.permute.xlu0 %1763  ;;  %v1021_v46 = vsel %vm1019_vm9, %v1018_v40, %v944_v47  ;;  %v1020_v51 = vsel %vm1019_vm9, %v1017_v48, %v943_v43 }
 0x67e   : > { %v998_v56 = vsel %vm602_vm10, %v993_v21, %v1740_v18  ;;  %v1766_v37 = vunpack.i.h.bf16 %v1764_v53  ;;  %v1765_v57 = vunpack.i.l.bf16 %v1764_v53  ;;  %v1029_v58 = vpack.c.bf16 %v1027_v54, %v1021_v46 }
 0x67f   : > { %v1026_v59 = vsel %vm1019_vm9, %v1024_v50, %v998_v56 }
 0x680   : > { %v1028_v52 = vpack.c.bf16 %v1026_v59, %v1020_v51  ;;  %1060 = vmatprep.subr.bf16.mxu0 %v1029_v58  ;;  %v1011_v60 = vsel %vm616_vm2, %v1765_v57, %v1766_v37 }
 0x681   : > { %v1010_v61 = vpop.permute.xlu1 %1009  ;;  %v1030_v62 = vpack.c.bf16 %v1011_v60, %v1011_v60 }
 0x682   : > { %v1012_v3 = vsel %vm616_vm2, %v1766_v37, %v1010_v61  ;;  %1061 = vmatpush1.bf16.msra.mxu0 %v1028_v52 }
 0x683   : > { %v1031_v4 = vpack.c.bf16 %v1012_v3, %v1012_v3  ;;  %v1055_v5 = vsel %vm868_vm7, %v1030_v62, 0 }
 0x685   : > { %1574 = vmatprep.subr.msk.bf16.mxu0 %vm868_vm7, %v1031_v4 }
 0x686   : > { %1063 = vmatpush1.bf16.msra.mxu0 %v1055_v5 }
 0x689   : > { %1575 = vmatmul.mubr.msk.bf16.vlgmr.msra.gmra.mrb[12].mxu0 %vm475_vm6, %v1888_v6 }
 0x68e   : > { %v1039_v10 = vpop.permute.xlu0 %1038 }
 0x692   : > { %v1044_v15 = vpop.permute.xlu1 %1043 }
 0x75c   : > { %v1094_v16 = vpop.f32.mrb[12].mxu0 }
 0x75d   : > { %v1095_v12 = vadd.f32 %v1094_v16, %v1039_v10  ;;  %v1096_v13 = vpop.f32.mrb[13].mxu0 }
 0x75e   : > { %v1097_v17 = vadd.f32 %v1096_v13, %v1039_v10  ;;  %v1098_v18 = vpop.f32.mrb[14].mxu0 }
 0x75f   : > { %v1103_v34 = vmax.f32 %v1095_v12, 0.0  ;;  %v1099_v14 = vadd.f32 %v1098_v18, %v1044_v15  ;;  %v1100_v19 = vpop.f32.mrb[15].mxu0 }
 0x760   : > { %v1104_v22 = vmax.f32 %v1097_v17, 0.0  ;;  %v1101_v24 = vadd.f32 %v1100_v19, %v1044_v15 }
 0x761   : > { %1111 = vrot.lane.b32.xlu0 %v1103_v34, %s1965_s16  ;;  %v1105_v25 = vmax.f32 %v1099_v14, 0.0 }
 0x762   : > { %1113 = vrot.lane.b32.xlu1 %v1104_v22, %s1965_s16  ;;  %v1106_v26 = vmax.f32 %v1101_v24, 0.0 }
 0x765   : > { %1115 = vrot.lane.b32.xlu0 %v1105_v25, %s1965_s16 }
 0x766   : > { %1117 = vrot.lane.b32.xlu1 %v1106_v26, %s1965_s16  ;;  %s2663_s16 = smov 96  }
 0x7d3   : > { %v1112_v27 = vpop.permute.xlu0 %1111 }
 0x7d4   : > { %v1114_v8 = vpop.permute.xlu1 %1113  ;;  %v2414_v41 = vsel %vm434_vm4, 0.0, %v1112_v27 }
 0x7d5   : > { %v2404_v55 = vsel %vm434_vm4, %v1112_v27, %v1114_v8  ;;  %v2407_v30 = vsel %vm434_vm4, %v1114_v8, 0.0  ;;  %v1131_v37 = vmul.f32 %v2103_v9, %v2414_v41  ;;  %v1141_v62 = vmul.f32 %v2120_v20, %v2414_v41 }
 0x7d6   : > { %v2411_v33 = vpack.i.bf16 %v2407_v30, %v2404_v55  ;;  %v1132_v50 = vmul.f32 %v2107_v11, %v2404_v55  ;;  %v1142_v46 = vmul.f32 %v2404_v55, %v2173_v45  ;;  %v1143_v54 = vmul.f32 %v2147_v36, %v2407_v30 }
 0x7d7   : > { %v1116_v40 = vpop.permute.xlu0 %1115  ;;  %v1136_v59 = vmul.f32 %v2404_v55, %v2145_v35  ;;  %v1137_v52 = vmul.f32 %v2132_v28, %v2407_v30  ;;  %v1135_v3 = vmul.f32 %v2134_v29, %v2414_v41  ;;  %v1147_v14 = vmul.f32 %v2138_v32, %v2414_v41 }
 0x7d8   : > { %v2417_v23 = vsel %vm434_vm4, 0.0, %v1116_v40  ;;  %v1118_v47 = vpop.permute.xlu1 %1117  ;;  %1773 = vrot.lane.b32.xlu1 %v2411_v33, %s1976_s15  ;;  %1768 = vrot.lane.b32.xlu0 %v2411_v33, %s1972_s30  ;;  %v1797_v58 = vpack.i.bf16 %v1143_v54, %v1142_v46  ;;  %v1160_v27 = vmul.f32 %v2404_v55, %v2205_v2  ;;  %v1161_v8 = vmul.f32 %v2195_v63, %v2407_v30 }
 0x7d9   : > { %v2424_v43 = vsel %vm434_vm4, %v1116_v40, %v1118_v47  ;;  %v2428_v48 = vpack.i.bf16 %v2417_v23, %v2414_v41  ;;  %v1133_v53 = vmul.f32 %v2103_v9, %v2417_v23  ;;  %v2441_v56 = vsel %vm434_vm4, %v1118_v47, 0.0 }
 0x7da   : > { %v1134_v21 = vmul.f32 %v2107_v11, %v2424_v43  ;;  %v1787_v51 = vpack.i.bf16 %v2441_v56, %v2424_v43  ;;  %v1144_v9 = vmul.f32 %v2120_v20, %v2417_v23  ;;  %v1792_v60 = vpack.i.bf16 %v1137_v52, %v1136_v59 }
 0x7db   : > { %v1359_v57 = vpack.c.bf16 %v1133_v53, %v1131_v37  ;;  %v1138_v61 = vmul.f32 %v2134_v29, %v2417_v23  ;;  %v1145_v5 = vmul.f32 %v2424_v43, %v2173_v45  ;;  %v1146_v10 = vmul.f32 %v2147_v36, %v2441_v56 }
 0x7dc   : > { %1783 = vrot.lane.b32.xlu1 %v2428_v48, %s1976_s15  ;;  %1778 = vrot.lane.b32.xlu0 %v2428_v48, %s1972_s30  ;;  %v1360_v11 = vpack.c.bf16 %v1134_v21, %v1132_v50  ;;  %v1812_v4 = vpack.i.bf16 %v1144_v9, %v1141_v62  ;;  %v1139_v16 = vmul.f32 %v2424_v43, %v2145_v35  ;;  %v1982_v40 = vmov 1966171168  }
 0x7dd   : > { %v1807_v6 = vpack.i.bf16 %v1138_v61, %v1135_v3  ;;  %v1140_v20 = vmul.f32 %v2132_v28, %v2441_v56  ;;  %v1154_v29 = vmul.f32 %v2404_v55, %v2168_v44  ;;  %v1155_v45 = vmul.f32 %v2149_v38, %v2407_v30 }
 0x7de   : > { %1415 = vmatprep.subr.bf16.mxu1 %v1360_v11  ;;  %v1832_v12 = vpack.i.bf16 %v1146_v10, %v1145_v5  ;;  %v1148_v36 = vmul.f32 %v2404_v55, %v2161_v42  ;;  %v1149_v35 = vmul.f32 %v2136_v31, %v2407_v30  ;;  %v1151_v17 = vmul.f32 %v2424_v43, %v2161_v42  ;;  %v2525_v55 = vld.sshfl [vmem:[%s2648_s9] sm:$0x11 pattern:$0x75316420] }
 0x7df   : > { %1416 = vmatpush1.bf16.msra.mxu1 %v1359_v57  ;;  %v1817_v13 = vpack.i.bf16 %v1140_v20, %v1139_v16  ;;  %v1837_v28 = vpack.i.bf16 %v1155_v45, %v1154_v29  ;;  %v1152_v18 = vmul.f32 %v2136_v31, %v2441_v56  ;;  %v1150_v34 = vmul.f32 %v2138_v32, %v2417_v23 }
 0x7e0   : > { %1798 = vrot.lane.b32.xlu0 %v1797_v58, %s2661_s25  ;;  %1788 = vrot.lane.b32.xlu1 %v1787_v51, %s1972_s30  ;;  %v1822_v15 = vpack.i.bf16 %v1149_v35, %v1148_v36  ;;  %s2664_s30 = smov 110   ;;  %v1156_v24 = vmul.f32 %v2151_v39, %v2417_v23  ;;  %v1153_v31 = vmul.f32 %v2151_v39, %v2414_v41  ;;  %v2528_v30 = vshrl.u32 %v389_v1, 7  ;;  %v1378_v1 = vld [vmem:[#allocation2] sm:$0x1] }
 0x7e1   : > { %v1842_v19 = vpack.i.bf16 %v1152_v18, %v1151_v17  ;;  %v1827_v22 = vpack.i.bf16 %v1150_v34, %v1147_v14  ;;  %v1157_v25 = vmul.f32 %v2424_v43, %v2168_v44  ;;  %v1158_v26 = vmul.f32 %v2149_v38, %v2441_v56 }
 0x7e2   : > { %v1847_v42 = vpack.i.bf16 %v1156_v24, %v1153_v31  ;;  %v1162_v39 = vmul.f32 %v2197_v0, %v2417_v23  ;;  %v1872_v38 = vpack.i.bf16 %v1161_v8, %v1160_v27  ;;  %v1163_v44 = vmul.f32 %v2424_v43, %v2205_v2 }
 0x7e3   : > { %v1862_v32 = vpack.i.bf16 %v1158_v26, %v1157_v25  ;;  %v1398_v47 = vunpack.c.l.s4 %v1982_v40  ;;  %v1159_v2 = vmul.f32 %v2197_v0, %v2414_v41 }
 0x7e4   : > { %1803 = vrot.lane.b32.xlu0 %v1787_v51, %s1976_s15  ;;  %1793 = vrot.lane.b32.xlu1 %v1792_v60, %s1974_s13 }
 0x7e5   : > { %v1399_v23 = vunpack.c.0.s8 %v1398_v47  ;;  %v1882_v43 = vpack.i.bf16 %v1162_v39, %v1159_v2 }
 0x7e7   : > { %v2538_v21 = vsub.s32 %v1399_v23, %v2528_v30 }
 0x7e8   : > { %1813 = vrot.lane.b32.xlu0 %v1812_v4, %s2661_s25  ;;  %1808 = vrot.lane.b32.xlu1 %v1807_v6, %s1974_s13 }
 0x7ec   : > { %1833 = vrot.lane.b32.xlu1 %v1832_v12, %s2661_s25  ;;  %1818 = vrot.lane.b32.xlu0 %v1817_v13, %s1974_s13 }
 0x7f0   : > { %1838 = vrot.lane.b32.xlu1 %v1837_v28, %s2663_s16  ;;  %1823 = vrot.lane.b32.xlu0 %v1822_v15, %s2664_s30 }
 0x7f4   : > { %1843 = vrot.lane.b32.xlu1 %v1842_v19, %s2664_s30  ;;  %1828 = vrot.lane.b32.xlu0 %v1827_v22, %s2664_s30 }
 0x7f8   : > { %1848 = vrot.lane.b32.xlu1 %v1847_v42, %s2663_s16  ;;  %1853 = vrot.lane.b32.xlu0 %v2411_v33, %s1975_s14  ;;  %v1164_v33 = vmul.f32 %v2195_v63, %v2441_v56  ;;  %v1396_v63 = vcombine.high %v2525_v55, %v2525_v55 }
 0x7fa   : > { %v1877_v50 = vpack.i.bf16 %v1164_v33, %v1163_v44  ;;  %v1410_v53 = vrot.slane %v1396_v63, %v2538_v21 }
 0x7fc   : > { %1858 = vrot.lane.b32.xlu1 %v1787_v51, %s1975_s14  ;;  %1863 = vrot.lane.b32.xlu0 %v1862_v32, %s2663_s16 }
 0x7fd   : > { %1577 = vmatprep.mubr.msk.bf16.mxu1 %vm463_vm8, %v1410_v53 }
 0x800   : > { %1873 = vrot.lane.b32.xlu1 %v1872_v38, %s2662_s26  ;;  %1868 = vrot.lane.b32.xlu0 %v2428_v48, %s1975_s14  ;;  %v1403_v48 = vrot.slane %v2525_v55, %v2538_v21  ;;  %s379_s14 = sand.u32 1, %s1955_s20  }
 0x801   : > { %s1561_s25 = sshll.u32 %s379_s14, 3  ;;  %s1484_s30 = scalar_lea.sflag [#allocation4], %s379_s14 }
 0x802   : > { %s381_s12 = scalar_lea.vmem [#allocation3], %s1561_s25 }
 0x803   : > { %s1498_s23 = sshll.u32 %s381_s12, 4  ;;  %s2599_s23 = int_to_ptr.vmem [resolvable:$true] %s1498_s23 }
 0x804   : > { %1883 = vrot.lane.b32.xlu1 %v1882_v43, %s2662_s26  ;;  %1878 = vrot.lane.b32.xlu0 %v1877_v50, %s2662_s26  ;;  %s1586_s26 = sshll.u32 %s2068_s10, 7  ;;  %s1901_s13 = scalar_lea.vmem %s2599_s23, 128 }
 0x805   : > { %s2597_s16 = scalar_lea.hbm %s2650_s11, %s1586_s26  ;;  %p1902_p11 = scmp.ne.s32.totalorder %s2599_s23, %s1901_s13 }
 0x806   : > { %s1983_s10 = smov [#allocation3]  }
 0x807   : > { %p1903_p12 = pnand %p1902_p11, %p2085_p5  ;;  %s1905_s15 = sshll.u32 %s1983_s10, 4  ;;  %s1906_s15 = int_to_ptr.vmem [resolvable:$false] %s1905_s15 }
 0x808   : > { %1381 = vperm.xlu0 %1726, %v1378_v1   ;;  %s1907_s25 = scalar_lea.vmem %s1906_s15, 256  ;;  %p1908_p0 = scmp.lt.s32.totalorder %s2599_s23, %s1906_s15 }
 0x809   : > { %p1904_p13 = pneg %p1903_p12  ;;  %p1909_p1 = scmp.lt.s32.totalorder %s1907_s25, %s1901_s13 }
 0x80b   : > { %p1910_p2 = por %p1909_p1, %p1908_p0 }
 0x80d   : > { %p1911_p3 = pnand %p1910_p2, %p1904_p13 }
 0x84a   : > { %v2546_v0 = vpop.permute.xlu1 %1773  ;;  %v1769_v41 = vpop.permute.xlu0 %1768 }
 0x84b   : > { %v1771_v56 = vunpack.i.h.bf16 %v1769_v41  ;;  %v1770_v37 = vunpack.i.l.bf16 %v1769_v41  ;;  %v1776_v45 = vunpack.i.h.bf16 %v2546_v0  ;;  %v1775_v12 = vunpack.i.l.bf16 %v2546_v0 }
 0x84d   : > { %v1182_v9 = vsel %vm518_vm15, %v1770_v37, %v1771_v56  ;;  %v1254_v43 = vsel %vm560_vm11, %v1775_v12, %v1776_v45 }
 0x84e   : > { %v2548_v46 = vpop.permute.xlu1 %1783  ;;  %v1779_v54 = vpop.permute.xlu0 %1778 }
 0x84f   : > { %v1780_v11 = vunpack.i.l.bf16 %v1779_v54  ;;  %v1781_v51 = vunpack.i.h.bf16 %v1779_v54  ;;  %v1786_v63 = vunpack.i.h.bf16 %v2548_v46  ;;  %v1785_v1 = vunpack.i.l.bf16 %v2548_v46 }
 0x851   : > { %v1181_v61 = vsel %vm518_vm15, %v1780_v11, %v1770_v37  ;;  %v1253_v46 = vsel %vm560_vm11, %v1785_v1, %v1775_v12 }
 0x852   : > { %v1789_v57 = vpop.permute.xlu1 %1788  ;;  %v1799_v58 = vpop.permute.xlu0 %1798 }
 0x853   : > { %v1791_v59 = vunpack.i.h.bf16 %v1789_v57  ;;  %v1790_v52 = vunpack.i.l.bf16 %v1789_v57  ;;  %v1801_v36 = vunpack.i.h.bf16 %v1799_v58  ;;  %v1800_v35 = vunpack.i.l.bf16 %v1799_v58 }
 0x855   : > { %v1184_v60 = vsel %vm518_vm15, %v1790_v52, %v1791_v59  ;;  %v1183_v62 = vsel %vm518_vm15, %v1781_v51, %v1790_v52  ;;  %v1234_v40 = vsel %vm549_vm1, %v1800_v35, %v1801_v36 }
 0x856   : > { %v1794_v3 = vpop.permute.xlu1 %1793  ;;  %v1804_v4 = vpop.permute.xlu0 %1803  ;;  %v1362_v5 = vpack.c.bf16 %v1184_v60, %v1182_v9  ;;  %v1361_v6 = vpack.c.bf16 %v1183_v62, %v1181_v61 }
 0x857   : > { %v1796_v20 = vunpack.i.h.bf16 %v1794_v3  ;;  %v1795_v29 = vunpack.i.l.bf16 %v1794_v3  ;;  %v1806_v28 = vunpack.i.h.bf16 %v1804_v4  ;;  %v1805_v24 = vunpack.i.l.bf16 %v1804_v4 }
 0x858   : > { %1417 = vmatprep.subr.bf16.mxu1 %v1362_v5 }
 0x859   : > { %1418 = vmatpush1.bf16.msra.mxu1 %v1361_v6  ;;  %v1208_v25 = vsel %vm532_vm0, %v1795_v29, %v1796_v20  ;;  %v1256_v50 = vsel %vm560_vm11, %v1805_v24, %v1806_v28  ;;  %v1255_v59 = vsel %vm560_vm11, %v1786_v63, %v1805_v24 }
 0x85a   : > { %v1809_v10 = vpop.permute.xlu1 %1808  ;;  %v1814_v16 = vpop.permute.xlu0 %1813  ;;  %v1368_v51 = vpack.c.bf16 %v1256_v50, %v1254_v43  ;;  %v1367_v61 = vpack.c.bf16 %v1255_v59, %v1253_v46 }
 0x85b   : > { %v1810_v13 = vunpack.i.l.bf16 %v1809_v10  ;;  %v1811_v15 = vunpack.i.h.bf16 %v1809_v10  ;;  %v1816_v31 = vunpack.i.h.bf16 %v1814_v16  ;;  %v1815_v42 = vunpack.i.l.bf16 %v1814_v16 }
 0x85d   : > { %v1207_v32 = vsel %vm532_vm0, %v1810_v13, %v1795_v29  ;;  %v1233_v23 = vsel %vm549_vm1, %v1815_v42, %v1800_v35 }
 0x85e   : > { %v1834_v17 = vpop.permute.xlu1 %1833  ;;  %v1819_v18 = vpop.permute.xlu0 %1818 }
 0x85f   : > { %v1836_v34 = vunpack.i.h.bf16 %v1834_v17  ;;  %v1835_v14 = vunpack.i.l.bf16 %v1834_v17  ;;  %v1821_v19 = vunpack.i.h.bf16 %v1819_v18  ;;  %v1820_v22 = vunpack.i.l.bf16 %v1819_v18 }
 0x861   : > { %v1210_v26 = vsel %vm532_vm0, %v1820_v22, %v1821_v19  ;;  %v1209_v27 = vsel %vm532_vm0, %v1811_v15, %v1820_v22  ;;  %v1236_v8 = vsel %vm549_vm1, %v1835_v14, %v1836_v34  ;;  %v1235_v47 = vsel %vm549_vm1, %v1816_v31, %v1835_v14 }
 0x862   : > { %v1839_v39 = vpop.permute.xlu1 %1838  ;;  %v1824_v38 = vpop.permute.xlu0 %1823  ;;  %v1364_v44 = vpack.c.bf16 %v1210_v26, %v1208_v25  ;;  %v1363_v33 = vpack.c.bf16 %v1209_v27, %v1207_v32  ;;  %v1366_v2 = vpack.c.bf16 %v1236_v8, %v1234_v40  ;;  %v1365_v56 = vpack.c.bf16 %v1235_v47, %v1233_v23 }
 0x863   : > { %v1826_v53 = vunpack.i.h.bf16 %v1824_v38  ;;  %v1825_v0 = vunpack.i.l.bf16 %v1824_v38  ;;  %v1841_v5 = vunpack.i.h.bf16 %v1839_v39  ;;  %v1840_v6 = vunpack.i.l.bf16 %v1839_v39 }
 0x864   : > { %1419 = vmatprep.subr.bf16.mxu1 %v1364_v44 }
 0x865   : > { %1420 = vmatpush1.bf16.msra.mxu1 %v1363_v33  ;;  %v1280_v62 = vsel %vm577_vm13, %v1825_v0, %v1826_v53  ;;  %v1306_v18 = vsel %vm591_vm12, %v1840_v6, %v1841_v5 }
 0x866   : > { %v1844_v41 = vpop.permute.xlu1 %1843  ;;  %v1829_v54 = vpop.permute.xlu0 %1828  ;;  %1421 = vmatprep.subr.bf16.mxu1 %v1366_v2 }
 0x867   : > { %v1846_v37 = vunpack.i.h.bf16 %v1844_v41  ;;  %v1845_v11 = vunpack.i.l.bf16 %v1844_v41  ;;  %v1831_v57 = vunpack.i.h.bf16 %v1829_v54  ;;  %v1830_v58 = vunpack.i.l.bf16 %v1829_v54 }
 0x869   : > { %1422 = vmatpush1.bf16.msra.mxu1 %v1365_v56  ;;  %v1282_v52 = vsel %vm577_vm13, %v1845_v11, %v1846_v37  ;;  %v1279_v3 = vsel %vm577_vm13, %v1830_v58, %v1825_v0  ;;  %v1281_v4 = vsel %vm577_vm13, %v1831_v57, %v1845_v11  ;;  %v1386_v37 = vsub.s32 0, %v2528_v30 }
 0x86a   : > { %v1849_v9 = vpop.permute.xlu1 %1848  ;;  %v1854_v60 = vpop.permute.xlu0 %1853  ;;  %1423 = vmatprep.subr.bf16.mxu1 %v1368_v51  ;;  %v1370_v10 = vpack.c.bf16 %v1282_v52, %v1280_v62  ;;  %v1369_v35 = vpack.c.bf16 %v1281_v4, %v1279_v3 }
 0x86b   : > { %v1850_v16 = vunpack.i.l.bf16 %v1849_v9  ;;  %v1851_v20 = vunpack.i.h.bf16 %v1849_v9  ;;  %v1856_v29 = vunpack.i.h.bf16 %v1854_v60  ;;  %v1855_v45 = vunpack.i.l.bf16 %v1854_v60 }
 0x86d   : > { %1424 = vmatpush1.bf16.msra.mxu1 %v1367_v61  ;;  %v1305_v14 = vsel %vm591_vm12, %v1850_v16, %v1840_v6  ;;  %v1326_v27 = vsel %vm602_vm10, %v1855_v45, %v1856_v29 }
 0x86e   : > { %v1859_v13 = vpop.permute.xlu1 %1858  ;;  %v1864_v36 = vpop.permute.xlu0 %1863  ;;  %1425 = vmatprep.subr.bf16.mxu1 %v1370_v10 }
 0x86f   : > { %v1861_v12 = vunpack.i.h.bf16 %v1859_v13  ;;  %v1860_v28 = vunpack.i.l.bf16 %v1859_v13  ;;  %v1866_v15 = vunpack.i.h.bf16 %v1864_v36  ;;  %v1865_v17 = vunpack.i.l.bf16 %v1864_v36 }
 0x871   : > { %1426 = vmatpush1.bf16.msra.mxu1 %v1369_v35  ;;  %v1308_v34 = vsel %vm591_vm12, %v1865_v17, %v1866_v15  ;;  %v1307_v19 = vsel %vm591_vm12, %v1851_v20, %v1865_v17  ;;  %v1328_v22 = vsel %vm602_vm10, %v1860_v28, %v1861_v12 }
 0x872   : > { %v1874_v24 = vpop.permute.xlu1 %1873  ;;  %v1869_v31 = vpop.permute.xlu0 %1868  ;;  %v1372_v42 = vpack.c.bf16 %v1308_v34, %v1306_v18  ;;  %v1371_v25 = vpack.c.bf16 %v1307_v19, %v1305_v14  ;;  %v1374_v8 = vpack.c.bf16 %v1328_v22, %v1326_v27 }
 0x873   : > { %v1871_v26 = vunpack.i.h.bf16 %v1869_v31  ;;  %v1870_v32 = vunpack.i.l.bf16 %v1869_v31  ;;  %v1876_v39 = vunpack.i.h.bf16 %v1874_v24  ;;  %v1875_v38 = vunpack.i.l.bf16 %v1874_v24 }
 0x874   : > { %1427 = vmatprep.subr.bf16.mxu1 %v1372_v42 }
 0x875   : > { %1428 = vmatpush1.bf16.msra.mxu1 %v1371_v25  ;;  %v1325_v44 = vsel %vm602_vm10, %v1870_v32, %v1855_v45  ;;  %v1327_v33 = vsel %vm602_vm10, %v1871_v26, %v1860_v28  ;;  %v1352_v1 = vsel %vm616_vm2, %v1875_v38, %v1876_v39 }
 0x876   : > { %v1884_v40 = vpop.permute.xlu1 %1883  ;;  %v1879_v47 = vpop.permute.xlu0 %1878  ;;  %1429 = vmatprep.subr.bf16.mxu1 %v1374_v8  ;;  %v1373_v2 = vpack.c.bf16 %v1327_v33, %v1325_v44 }
 0x877   : > { %v1886_v63 = vunpack.i.h.bf16 %v1884_v40  ;;  %v1885_v23 = vunpack.i.l.bf16 %v1884_v40  ;;  %v1881_v43 = vunpack.i.h.bf16 %v1879_v47  ;;  %v1880_v50 = vunpack.i.l.bf16 %v1879_v47 }
 0x879   : > { %1430 = vmatpush1.bf16.msra.mxu1 %v1373_v2  ;;  %v1354_v53 = vsel %vm616_vm2, %v1880_v50, %v1881_v43  ;;  %v1351_v0 = vsel %vm616_vm2, %v1885_v23, %v1875_v38  ;;  %v1353_v41 = vsel %vm616_vm2, %v1886_v63, %v1880_v50 }
 0x87a   : > { %v1376_v54 = vpack.c.bf16 %v1354_v53, %v1352_v1  ;;  %v1375_v56 = vpack.c.bf16 %v1353_v41, %v1351_v0 }
 0x87c   : > { %1431 = vmatprep.subr.bf16.mxu1 %v1376_v54 }
 0x87d   : > { %1432 = vmatpush1.bf16.msra.mxu1 %v1375_v56 }
 0x880   : > { %1448 = vmatmul.mubr.bf16.vlgmr.msra.gmra.mrb[0].mxu1 %v1403_v48 }
 0x887   : > { %v1382_v11 = vpop.permute.xlu0 %1381 }
 0x888   : > { %v1387_v57 = vrot.slane %v1382_v11, %v1386_v37 }
 0x953   : > { %v1449_v58 = vpop.f32.mrb[0].mxu1 }
 0x954   : > { %v1450_v51 = vadd.f32 %v1449_v58, %v1387_v57  ;;  %v1451_v59 = vpop.f32.mrb[1].mxu1 }
 0x955   : > { %v1452_v52 = vadd.f32 %v1451_v59, %v1387_v57  ;;  %v1453_v9 = vpop.f32.mrb[2].mxu1 }
 0x956   : > { %v1578_v60 = vmul.f32 -1.442695, %v1450_v51  ;;  %v1454_v46 = vpop.f32.mrb[3].mxu1 }
 0x957   : > { %v1579_v61 = vmul.f32 -1.442695, %v1452_v52 }
 0x958   : > { %1893 = vpow2.f32 %v1578_v60 }
 0x959   : > { %1895 = vpow2.f32 %v1579_v61 }
 0x962   : > { %v1894_v62 = vpop.eup %1893 }
 0x963   : > { %v1896_v3 = vpop.eup %1895  ;;  %v1462_v55 = vadd.f32 1.0, %v1894_v62 }
 0x964   : > { %v1463_v21 = vadd.f32 1.0, %v1896_v3 }
 0x965   : > { %1897 = vrcp.f32 %v1462_v55 }
 0x966   : > { %1899 = vrcp.f32 %v1463_v21 }
 0x96f   : > { %v1898_v30 = vpop.eup %1897 }
 0x970   : > { %v1900_v48 = vpop.eup %1899  ;;  %v1471_v4 = vrot.slane %v1898_v30, %v1386_v37 }
 0x971   : > { %v1475_v5 = vrot.slane %v1900_v48, %v1386_v37 }
 0x972   : > { %v1476_v6 = vmul.f32 %v1471_v4, %v2285_v49 }
 0x973   : > { %v1477_v10 = vmul.f32 %v1475_v5, %v2287_v7 }
 0x975   : > { %v1480_v16 = vcombine.low %v1476_v6, %v1477_v10 }
 0x977   : > { %1482 = vst [vmem:[%s381_s12] sm:$0xff] %v1480_v16 }
 0x978   : > { %1914 = shalt.err (!%p1911_p3)
}
 0x979   : > { %s1915_s14 = scalar_lea.hbm %s2597_s16, 128  ;;  %s1919_s17 = scalar_lea.hbm %s2650_s11, 256 }
 0x97a   : > { %p1916_p4 = scmp.ne.s32.totalorder %s2597_s16, %s1915_s14  ;;  %p1920_p9 = scmp.lt.u32.totalorder %s2597_s16, %s2650_s11 }
 0x97b   : > { %p1921_p10 = scmp.lt.u32.totalorder %s1919_s17, %s1915_s14  ;;  %p1923_p12 = scmp.lt.u32.totalorder %s1915_s14, %s2597_s16 }
 0x97c   : > { %p1917_p7 = pnand %p1916_p4, %p2085_p5 }
 0x97d   : > { %p1922_p11 = por %p1921_p10, %p1920_p9 }
 0x97e   : > { %p1918_p8 = pneg %p1917_p7 }
 0x97f   : > { %p1924_p13 = por %p1923_p12, %p1922_p11 }
 0x981   : > { %p1925_p0 = pnand %p1924_p13, %p1918_p8 }
 0x983   : > { %1928 = shalt.err (!%p1925_p0)
}
 0x984   : > { %1603 = dma.vmem_to_hbm [thread:$0]  (%p2085_p5), %s2599_s23, 128, %s2597_s16, %s1484_s30  }
 0x985 PF: > { %p1609_p1 = scmp.ge.s32.totalorder %s1963_s22, 2  ;;  %s1510_s13 = sand.u32 1, %s1951_s19  }
 0x986   : > { %s1511_s15 = scalar_lea.sflag [#allocation4], %s1510_s13 }
 0x987   : > { %p1606_p2 = pnand %p1609_p1, %p2089_p6 }
 0x989   : > { %1946 = dma.done.wait (!%p1606_p2), %s1511_s15, 128  }
 0x98a   : > { %1948 = vsyncadd (!%p1606_p2), %s1511_s15, 4294967168  ;;  %p23_p3 = scmp.ge.s32.totalorder %s2072_s24, 4   ;;  %s2665_s19 = smov %s1955_s20 }
 0x98b   : > { %s2666_s20 = smov %s1959_s21  ;;  %s2667_s21 = smov %s2083_s27 }
 0x98c   : > { %s2668_s22 = smov %s2072_s24  ;;  %25 = sbr.rel (!%p23_p3) target bundleno = 6 (0x6), region = 99 }
 0x993   :  { %1516 = vsyncpa [#allocation4], 1 }
 0x994   :  { %1518 = vsyncpa [#allocation4 + $0x1], 1 }

</bundles_post_ra>
